<compile_context>
chip_gen: v7x
topology: tpu7x:2x2x1
jax: 0.10.0
libtpu: 0.0.40
codegen_flags: <defaults>
</compile_context>

<pallas_src>
import functools

import jax
import jax.numpy as jnp
from jax.experimental import pallas as pl
from jax.experimental.pallas import tpu as pltpu


# ----------------------------- helpers -----------------------------
def _cdiv(a, b):
    return (a + b - 1) // b


def _round_up(a, b):
    return _cdiv(a, b) * b


def _default_time_dtype():
    """bf16 time-att branch on bf16-capable VPU/EUP generations (v6e/v7x); f32 otherwise."""
    try:
        kind = jax.devices()[0].device_kind.lower()
    except Exception:
        return jnp.float32
    if ("v6" in kind) or ("v7" in kind) or ("tpu7" in kind):
        return jnp.bfloat16
    return jnp.float32   # v5e and older: no bf16 VPU/EUP -> casting only adds converts


# ----------------------------- Pallas kernel -----------------------------
def mlp_kernel(tw0_ref, tb0_ref, tw1_ref, tb1_ref, b2_ref,      # SMEM scalars / tiny vectors (f32)
               x_ref,                                           # (2, F, BM): plane 0 = time, 1 = input
               w0_ref, b0_ref, w1_ref, b1_ref, w2_ref,          # resident weights (VMEM)
               o_ref,                                           # (1, BM) lane-dense output
               *, time_dtype, cb, th):
    n_chunks = o_ref.shape[1] // cb                             # static

    # Column-chunked so the 32-step tanh/MAC loop keeps its operands register-resident.
    @pl.loop(0, n_chunks)
    def _(c):
        start = pl.multiple_of(c * cb, cb)
        sl = pl.ds(start, cb)

        # *100 is folded into tw0 in the wrapper, so `t` is used as-is.
        t = x_ref[0, :, sl].astype(time_dtype)                  # [F, cb]
        xin = x_ref[1, :, sl]                                   # [F, cb] f32

        # time-att branch (fused): att = tanh(sum_k tanh(t*w0[k]+b0[k]) * w1[k] + b1)
        # Two accumulators (even/odd k) -> two independent add chains, smaller rounding walk.
        acc0 = jnp.zeros(t.shape, time_dtype)
        acc1 = jnp.zeros(t.shape, time_dtype)
        for k in range(th):                                     # static unroll over 32 scalars
            w0k = tw0_ref[k].astype(time_dtype)
            b0k = tb0_ref[k].astype(time_dtype)
            w1k = tw1_ref[k].astype(time_dtype)
            hk = jnp.tanh(t * w0k + b0k) * w1k
            if k % 2 == 0:
                acc0 = acc0 + hk
            else:
                acc1 = acc1 + hk
        att = jnp.tanh(acc0.astype(jnp.float32) + acc1.astype(jnp.float32) + tb1_ref[0])

        xh = xin * att                                          # attention gating, [F, cb]

        # main MLP (batch on lanes): h = tanh(W @ x + b); MXU work is hidden under EUP slack.
        h1 = jnp.tanh(jnp.dot(w0_ref[...], xh,
                              preferred_element_type=jnp.float32) + b0_ref[...])   # [H1, cb]
        h2 = jnp.tanh(jnp.dot(w1_ref[...], h1,
                              preferred_element_type=jnp.float32) + b1_ref[...])   # [H2, cb]
        o_ref[:, sl] = jnp.tanh(jnp.dot(w2_ref[...], h2,
                                        preferred_element_type=jnp.float32) + b2_ref[0])


# ----------------------------- wrapper -----------------------------
def mlp_forward(x, params, *, block_b=4096, time_dtype=None):
    """x: [B, 2, F] float32 (x[:,0,:] = time, x[:,1,:] = input). Returns [B, 1] float32."""
    tw0, tb0, tw1, tb1, w0, b0, w1, b1, w2, b2 = params
    B, _, F = x.shape
    H1, H2 = w0.shape[0], w1.shape[0]
    TH = tw0.shape[0]

    if time_dtype is None:
        time_dtype = _default_time_dtype()

    # Batch tile: lane-aligned, big enough to amortize per-step overhead, but guaranteeing
    # >= 2 grid steps whenever B > 128 so both TensorCores are used on v7x.
    BM = max(128, min(block_b, _round_up(_cdiv(B, 2), 128)))
    if BM > 128:
        BM = _round_up(BM, 256)
    if BM >= 512:
        BM = _round_up(BM, 512)
    Bp = _round_up(B, BM)
    CB = min(512 if time_dtype == jnp.bfloat16 else 256, BM)    # in-kernel column chunk

    # Single transpose + pad: [B, 2, F] -> [2, F, Bp] lane-dense slab.
    xt = jnp.transpose(x, (1, 2, 0))
    if Bp != B:
        xt = jnp.pad(xt, ((0, 0), (0, 0), (0, Bp - B)))

    # Fold the module's `time * 100` into the first time-layer weights.
    tw0_scaled = tw0 * 100.0

    smem = pl.BlockSpec(memory_space=pltpu.MemorySpace.SMEM)
    kernel = functools.partial(mlp_kernel, time_dtype=time_dtype, cb=CB, th=TH)

    out = pl.pallas_call(
        kernel,
        out_shape=jax.ShapeDtypeStruct((1, Bp), jnp.float32),
        grid=(Bp // BM,),
        in_specs=[
            smem, smem, smem, smem, smem,                       # tw0*100, tb0, tw1, tb1, b2
            pl.BlockSpec((2, F, BM), lambda i: (0, 0, i)),      # [2, F, Bp] time/input slab
            pl.BlockSpec((H1, F), lambda i: (0, 0)),            # w0 (resident)
            pl.BlockSpec((H1, 1), lambda i: (0, 0)),            # b0
            pl.BlockSpec((H2, H1), lambda i: (0, 0)),           # w1
            pl.BlockSpec((H2, 1), lambda i: (0, 0)),            # b1
            pl.BlockSpec((1, H2), lambda i: (0, 0)),            # w2
        ],
        out_specs=pl.BlockSpec((1, BM), lambda i: (0, i)),      # lane-dense output slab
        compiler_params=pltpu.CompilerParams(
            dimension_semantics=("parallel",)),
    )(tw0_scaled, tb0, tw1, tb1, b2, xt, w0, b0, w1, b1, w2)

    return out[0, :B].reshape(B, 1)


# ----------------------------- parameter init (matches the PyTorch module) -----------------------------
def init_params(key, input_sizes, time_sizes):
    F, H1, H2, _ = input_sizes
    TH = time_sizes[1]
    kt0, kt1, k0, k1, k2 = jax.random.split(key, 5)

    # time-att layers: normal(0, 1) weights, zero biases
    tw0 = jax.random.normal(kt0, (TH,), jnp.float32)            # Linear(1, TH).weight (flattened)
    tb0 = jnp.zeros((TH,), jnp.float32)
    tw1 = jax.random.normal(kt1, (TH,), jnp.float32)            # Linear(TH, 1).weight (flattened)
    tb1 = jnp.zeros((1,), jnp.float32)

    # main layers: xavier_uniform weights (PyTorch [out, in] layout), zero biases
    def xavier(k, out_d, in_d):
        bound = (6.0 / (in_d + out_d)) ** 0.5
        return jax.random.uniform(k, (out_d, in_d), jnp.float32, -bound, bound)

    w0 = xavier(k0, H1, F)
    b0 = jnp.zeros((H1, 1), jnp.float32)
    w1 = xavier(k1, H2, H1)
    b1 = jnp.zeros((H2, 1), jnp.float32)
    w2 = xavier(k2, 1, H2)
    b2 = jnp.zeros((1,), jnp.float32)
    return (tw0, tb0, tw1, tb1, w0, b0, w1, b1, w2, b2)


# ----------------------------- pure-JAX reference (f32) -----------------------------
def ref_forward(x, params):
    tw0, tb0, tw1, tb1, w0, b0, w1, b1, w2, b2 = params
    time = x[:, 0, :]
    xin = x[:, 1, :]
    t = (time * 100.0).reshape(-1, 1)                           # [B*F, 1]
    h = jnp.tanh(t * tw0[None, :] + tb0[None, :])               # [B*F, TH]
    att = jnp.tanh(h @ tw1[:, None] + tb1)                      # [B*F, 1]
    att = att.reshape(xin.shape)                                # [B, F]
    xh = xin * att
    h1 = jnp.tanh(xh @ w0.T + b0[:, 0][None, :])
    h2 = jnp.tanh(h1 @ w1.T + b1[:, 0][None, :])
    return jnp.tanh(h2 @ w2.T + b2[None, :])                    # [B, 1]


if __name__ == "__main__":
    input_sizes = [16, 32, 32, 1]
    time_sizes = [1, 32, 1]
    F = input_sizes[0]

    key = jax.random.PRNGKey(0)
    kp, kx1, kx2 = jax.random.split(key, 3)
    params = init_params(kp, input_sizes, time_sizes)

    # Tolerance: tight on the f32 path (v5e and older); loosened on the bf16 time-att path
    # (v6e/v7x), as the reference runs the time branch in f32 (flagged in the perf review).
    time_dtype = _default_time_dtype()
    if time_dtype == jnp.float32:
        atol, rtol = 2e-5, 1e-5
    else:
        atol, rtol = 6e-2, 1e-2

    # Small case (single grid step, padded batch).
    x = jax.random.normal(kx1, (2, 2, F), jnp.float32)
    out = jax.block_until_ready(mlp_forward(x, params))
    ref = ref_forward(x, params)
    assert out.shape == (2, 1)
    assert jnp.allclose(out, ref, atol=atol, rtol=rtol), (out, ref)

    # Multi-block grid + partially padded last block.
    x2 = jax.random.normal(kx2, (300, 2, F), jnp.float32)
    out2 = jax.block_until_ready(mlp_forward(x2, params, block_b=128))
    ref2 = ref_forward(x2, params)
    assert out2.shape == (300, 1)
    assert jnp.allclose(out2, ref2, atol=atol, rtol=rtol), "multi-block mismatch"

    print("KERNEL_OK")
</pallas_src>

<mosaic_0001>
module attributes {stable_mosaic.version = 11 : i64} {
  func.func @mlp_kernel(%arg0: i32, %arg1: memref<32xf32, #tpu.memory_space<smem>>, %arg2: memref<32xf32, #tpu.memory_space<smem>>, %arg3: memref<32xf32, #tpu.memory_space<smem>>, %arg4: memref<1xf32, #tpu.memory_space<smem>>, %arg5: memref<1xf32, #tpu.memory_space<smem>>, %arg6: memref<2x16x128xf32, #tpu.memory_space<vmem>>, %arg7: memref<32x16xf32, #tpu.memory_space<vmem>>, %arg8: memref<32x1xf32, #tpu.memory_space<vmem>>, %arg9: memref<32x32xf32, #tpu.memory_space<vmem>>, %arg10: memref<32x1xf32, #tpu.memory_space<vmem>>, %arg11: memref<1x32xf32, #tpu.memory_space<vmem>>, %arg12: memref<1x128xf32, #tpu.memory_space<vmem>>) attributes {dimension_semantics = [#tpu.dimension_semantics<parallel>], iteration_bounds = array<i64: 1>, scalar_prefetch = 0 : i64, scratch_operands = 0 : i64, tpu.core_type = #tpu.core_type<tc>, window_params = [{transform_indices = @transform_0, window_bounds = array<i64: 32>}, {transform_indices = @transform_1, window_bounds = array<i64: 32>}, {transform_indices = @transform_2, window_bounds = array<i64: 32>}, {transform_indices = @transform_3, window_bounds = array<i64: 1>}, {transform_indices = @transform_4, window_bounds = array<i64: 1>}, {transform_indices = @transform_5, window_bounds = array<i64: 2, 16, 128>}, {pipeline_mode = #tpu.pipeline_mode<synchronous>, transform_indices = @transform_6, window_bounds = array<i64: 32, 16>}, {pipeline_mode = #tpu.pipeline_mode<synchronous>, transform_indices = @transform_7, window_bounds = array<i64: 32, 1>}, {pipeline_mode = #tpu.pipeline_mode<synchronous>, transform_indices = @transform_8, window_bounds = array<i64: 32, 32>}, {pipeline_mode = #tpu.pipeline_mode<synchronous>, transform_indices = @transform_9, window_bounds = array<i64: 32, 1>}, {pipeline_mode = #tpu.pipeline_mode<synchronous>, transform_indices = @transform_10, window_bounds = array<i64: 1, 32>}, {transform_indices = @transform_11, window_bounds = array<i64: 1, 128>}]} {
    %c0_i32 = arith.constant 0 : i32
    %c1_i32 = arith.constant 1 : i32
    %0 = arith.muli %c0_i32, %c1_i32 : i32
    %c0_i32_0 = arith.constant 0 : i32
    %1 = arith.addi %c0_i32_0, %0 : i32
    %c128_i32 = arith.constant 128 : i32
    %2 = arith.muli %1, %c128_i32 : i32
    %3 = tpu.assume_multiple %2, 128 : i32
    %c0 = arith.constant 0 : index
    %c0_1 = arith.constant 0 : index
    %4 = arith.index_cast %3 : i32 to index
    %5 = vector.load %arg6[%c0, %c0_1, %4] : memref<2x16x128xf32, #tpu.memory_space<vmem>>, vector<1x16x128xf32>
    %6 = vector.shape_cast %5 : vector<1x16x128xf32> to vector<16x128xf32>
    %c1 = arith.constant 1 : index
    %c0_2 = arith.constant 0 : index
    %7 = arith.index_cast %3 : i32 to index
    %8 = vector.load %arg6[%c1, %c0_2, %7] : memref<2x16x128xf32, #tpu.memory_space<vmem>>, vector<1x16x128xf32>
    %9 = vector.shape_cast %8 : vector<1x16x128xf32> to vector<16x128xf32>
    %cst = arith.constant 0.000000e+00 : f32
    %10 = vector.broadcast %cst : f32 to vector<16x128xf32>
    %cst_3 = arith.constant 0.000000e+00 : f32
    %11 = vector.broadcast %cst_3 : f32 to vector<16x128xf32>
    %c0_4 = arith.constant 0 : index
    %12 = memref.load %arg1[%c0_4] : memref<32xf32, #tpu.memory_space<smem>>
    %c0_5 = arith.constant 0 : index
    %13 = memref.load %arg2[%c0_5] : memref<32xf32, #tpu.memory_space<smem>>
    %c0_6 = arith.constant 0 : index
    %14 = memref.load %arg3[%c0_6] : memref<32xf32, #tpu.memory_space<smem>>
    %15 = vector.broadcast %12 : f32 to vector<16x128xf32>
    %16 = arith.mulf %6, %15 : vector<16x128xf32>
    %17 = vector.broadcast %13 : f32 to vector<16x128xf32>
    %18 = arith.addf %16, %17 : vector<16x128xf32>
    %19 = math.tanh %18 : vector<16x128xf32>
    %20 = vector.broadcast %14 : f32 to vector<16x128xf32>
    %21 = arith.mulf %19, %20 : vector<16x128xf32>
    %22 = arith.addf %10, %21 : vector<16x128xf32>
    %c1_7 = arith.constant 1 : index
    %23 = memref.load %arg1[%c1_7] : memref<32xf32, #tpu.memory_space<smem>>
    %c1_8 = arith.constant 1 : index
    %24 = memref.load %arg2[%c1_8] : memref<32xf32, #tpu.memory_space<smem>>
    %c1_9 = arith.constant 1 : index
    %25 = memref.load %arg3[%c1_9] : memref<32xf32, #tpu.memory_space<smem>>
    %26 = vector.broadcast %23 : f32 to vector<16x128xf32>
    %27 = arith.mulf %6, %26 : vector<16x128xf32>
    %28 = vector.broadcast %24 : f32 to vector<16x128xf32>
    %29 = arith.addf %27, %28 : vector<16x128xf32>
    %30 = math.tanh %29 : vector<16x128xf32>
    %31 = vector.broadcast %25 : f32 to vector<16x128xf32>
    %32 = arith.mulf %30, %31 : vector<16x128xf32>
    %33 = arith.addf %11, %32 : vector<16x128xf32>
    %c2 = arith.constant 2 : index
    %34 = memref.load %arg1[%c2] : memref<32xf32, #tpu.memory_space<smem>>
    %c2_10 = arith.constant 2 : index
    %35 = memref.load %arg2[%c2_10] : memref<32xf32, #tpu.memory_space<smem>>
    %c2_11 = arith.constant 2 : index
    %36 = memref.load %arg3[%c2_11] : memref<32xf32, #tpu.memory_space<smem>>
    %37 = vector.broadcast %34 : f32 to vector<16x128xf32>
    %38 = arith.mulf %6, %37 : vector<16x128xf32>
    %39 = vector.broadcast %35 : f32 to vector<16x128xf32>
    %40 = arith.addf %38, %39 : vector<16x128xf32>
    %41 = math.tanh %40 : vector<16x128xf32>
    %42 = vector.broadcast %36 : f32 to vector<16x128xf32>
    %43 = arith.mulf %41, %42 : vector<16x128xf32>
    %44 = arith.addf %22, %43 : vector<16x128xf32>
    %c3 = arith.constant 3 : index
    %45 = memref.load %arg1[%c3] : memref<32xf32, #tpu.memory_space<smem>>
    %c3_12 = arith.constant 3 : index
    %46 = memref.load %arg2[%c3_12] : memref<32xf32, #tpu.memory_space<smem>>
    %c3_13 = arith.constant 3 : index
    %47 = memref.load %arg3[%c3_13] : memref<32xf32, #tpu.memory_space<smem>>
    %48 = vector.broadcast %45 : f32 to vector<16x128xf32>
    %49 = arith.mulf %6, %48 : vector<16x128xf32>
    %50 = vector.broadcast %46 : f32 to vector<16x128xf32>
    %51 = arith.addf %49, %50 : vector<16x128xf32>
    %52 = math.tanh %51 : vector<16x128xf32>
    %53 = vector.broadcast %47 : f32 to vector<16x128xf32>
    %54 = arith.mulf %52, %53 : vector<16x128xf32>
    %55 = arith.addf %33, %54 : vector<16x128xf32>
    %c4 = arith.constant 4 : index
    %56 = memref.load %arg1[%c4] : memref<32xf32, #tpu.memory_space<smem>>
    %c4_14 = arith.constant 4 : index
    %57 = memref.load %arg2[%c4_14] : memref<32xf32, #tpu.memory_space<smem>>
    %c4_15 = arith.constant 4 : index
    %58 = memref.load %arg3[%c4_15] : memref<32xf32, #tpu.memory_space<smem>>
    %59 = vector.broadcast %56 : f32 to vector<16x128xf32>
    %60 = arith.mulf %6, %59 : vector<16x128xf32>
    %61 = vector.broadcast %57 : f32 to vector<16x128xf32>
    %62 = arith.addf %60, %61 : vector<16x128xf32>
    %63 = math.tanh %62 : vector<16x128xf32>
    %64 = vector.broadcast %58 : f32 to vector<16x128xf32>
    %65 = arith.mulf %63, %64 : vector<16x128xf32>
    %66 = arith.addf %44, %65 : vector<16x128xf32>
    %c5 = arith.constant 5 : index
    %67 = memref.load %arg1[%c5] : memref<32xf32, #tpu.memory_space<smem>>
    %c5_16 = arith.constant 5 : index
    %68 = memref.load %arg2[%c5_16] : memref<32xf32, #tpu.memory_space<smem>>
    %c5_17 = arith.constant 5 : index
    %69 = memref.load %arg3[%c5_17] : memref<32xf32, #tpu.memory_space<smem>>
    %70 = vector.broadcast %67 : f32 to vector<16x128xf32>
    %71 = arith.mulf %6, %70 : vector<16x128xf32>
    %72 = vector.broadcast %68 : f32 to vector<16x128xf32>
    %73 = arith.addf %71, %72 : vector<16x128xf32>
    %74 = math.tanh %73 : vector<16x128xf32>
    %75 = vector.broadcast %69 : f32 to vector<16x128xf32>
    %76 = arith.mulf %74, %75 : vector<16x128xf32>
    %77 = arith.addf %55, %76 : vector<16x128xf32>
    %c6 = arith.constant 6 : index
    %78 = memref.load %arg1[%c6] : memref<32xf32, #tpu.memory_space<smem>>
    %c6_18 = arith.constant 6 : index
    %79 = memref.load %arg2[%c6_18] : memref<32xf32, #tpu.memory_space<smem>>
    %c6_19 = arith.constant 6 : index
    %80 = memref.load %arg3[%c6_19] : memref<32xf32, #tpu.memory_space<smem>>
    %81 = vector.broadcast %78 : f32 to vector<16x128xf32>
    %82 = arith.mulf %6, %81 : vector<16x128xf32>
    %83 = vector.broadcast %79 : f32 to vector<16x128xf32>
    %84 = arith.addf %82, %83 : vector<16x128xf32>
    %85 = math.tanh %84 : vector<16x128xf32>
    %86 = vector.broadcast %80 : f32 to vector<16x128xf32>
    %87 = arith.mulf %85, %86 : vector<16x128xf32>
    %88 = arith.addf %66, %87 : vector<16x128xf32>
    %c7 = arith.constant 7 : index
    %89 = memref.load %arg1[%c7] : memref<32xf32, #tpu.memory_space<smem>>
    %c7_20 = arith.constant 7 : index
    %90 = memref.load %arg2[%c7_20] : memref<32xf32, #tpu.memory_space<smem>>
    %c7_21 = arith.constant 7 : index
    %91 = memref.load %arg3[%c7_21] : memref<32xf32, #tpu.memory_space<smem>>
    %92 = vector.broadcast %89 : f32 to vector<16x128xf32>
    %93 = arith.mulf %6, %92 : vector<16x128xf32>
    %94 = vector.broadcast %90 : f32 to vector<16x128xf32>
    %95 = arith.addf %93, %94 : vector<16x128xf32>
    %96 = math.tanh %95 : vector<16x128xf32>
    %97 = vector.broadcast %91 : f32 to vector<16x128xf32>
    %98 = arith.mulf %96, %97 : vector<16x128xf32>
    %99 = arith.addf %77, %98 : vector<16x128xf32>
    %c8 = arith.constant 8 : index
    %100 = memref.load %arg1[%c8] : memref<32xf32, #tpu.memory_space<smem>>
    %c8_22 = arith.constant 8 : index
    %101 = memref.load %arg2[%c8_22] : memref<32xf32, #tpu.memory_space<smem>>
    %c8_23 = arith.constant 8 : index
    %102 = memref.load %arg3[%c8_23] : memref<32xf32, #tpu.memory_space<smem>>
    %103 = vector.broadcast %100 : f32 to vector<16x128xf32>
    %104 = arith.mulf %6, %103 : vector<16x128xf32>
    %105 = vector.broadcast %101 : f32 to vector<16x128xf32>
    %106 = arith.addf %104, %105 : vector<16x128xf32>
    %107 = math.tanh %106 : vector<16x128xf32>
    %108 = vector.broadcast %102 : f32 to vector<16x128xf32>
    %109 = arith.mulf %107, %108 : vector<16x128xf32>
    %110 = arith.addf %88, %109 : vector<16x128xf32>
    %c9 = arith.constant 9 : index
    %111 = memref.load %arg1[%c9] : memref<32xf32, #tpu.memory_space<smem>>
    %c9_24 = arith.constant 9 : index
    %112 = memref.load %arg2[%c9_24] : memref<32xf32, #tpu.memory_space<smem>>
    %c9_25 = arith.constant 9 : index
    %113 = memref.load %arg3[%c9_25] : memref<32xf32, #tpu.memory_space<smem>>
    %114 = vector.broadcast %111 : f32 to vector<16x128xf32>
    %115 = arith.mulf %6, %114 : vector<16x128xf32>
    %116 = vector.broadcast %112 : f32 to vector<16x128xf32>
    %117 = arith.addf %115, %116 : vector<16x128xf32>
    %118 = math.tanh %117 : vector<16x128xf32>
    %119 = vector.broadcast %113 : f32 to vector<16x128xf32>
    %120 = arith.mulf %118, %119 : vector<16x128xf32>
    %121 = arith.addf %99, %120 : vector<16x128xf32>
    %c10 = arith.constant 10 : index
    %122 = memref.load %arg1[%c10] : memref<32xf32, #tpu.memory_space<smem>>
    %c10_26 = arith.constant 10 : index
    %123 = memref.load %arg2[%c10_26] : memref<32xf32, #tpu.memory_space<smem>>
    %c10_27 = arith.constant 10 : index
    %124 = memref.load %arg3[%c10_27] : memref<32xf32, #tpu.memory_space<smem>>
    %125 = vector.broadcast %122 : f32 to vector<16x128xf32>
    %126 = arith.mulf %6, %125 : vector<16x128xf32>
    %127 = vector.broadcast %123 : f32 to vector<16x128xf32>
    %128 = arith.addf %126, %127 : vector<16x128xf32>
    %129 = math.tanh %128 : vector<16x128xf32>
    %130 = vector.broadcast %124 : f32 to vector<16x128xf32>
    %131 = arith.mulf %129, %130 : vector<16x128xf32>
    %132 = arith.addf %110, %131 : vector<16x128xf32>
    %c11 = arith.constant 11 : index
    %133 = memref.load %arg1[%c11] : memref<32xf32, #tpu.memory_space<smem>>
    %c11_28 = arith.constant 11 : index
    %134 = memref.load %arg2[%c11_28] : memref<32xf32, #tpu.memory_space<smem>>
    %c11_29 = arith.constant 11 : index
    %135 = memref.load %arg3[%c11_29] : memref<32xf32, #tpu.memory_space<smem>>
    %136 = vector.broadcast %133 : f32 to vector<16x128xf32>
    %137 = arith.mulf %6, %136 : vector<16x128xf32>
    %138 = vector.broadcast %134 : f32 to vector<16x128xf32>
    %139 = arith.addf %137, %138 : vector<16x128xf32>
    %140 = math.tanh %139 : vector<16x128xf32>
    %141 = vector.broadcast %135 : f32 to vector<16x128xf32>
    %142 = arith.mulf %140, %141 : vector<16x128xf32>
    %143 = arith.addf %121, %142 : vector<16x128xf32>
    %c12 = arith.constant 12 : index
    %144 = memref.load %arg1[%c12] : memref<32xf32, #tpu.memory_space<smem>>
    %c12_30 = arith.constant 12 : index
    %145 = memref.load %arg2[%c12_30] : memref<32xf32, #tpu.memory_space<smem>>
    %c12_31 = arith.constant 12 : index
    %146 = memref.load %arg3[%c12_31] : memref<32xf32, #tpu.memory_space<smem>>
    %147 = vector.broadcast %144 : f32 to vector<16x128xf32>
    %148 = arith.mulf %6, %147 : vector<16x128xf32>
    %149 = vector.broadcast %145 : f32 to vector<16x128xf32>
    %150 = arith.addf %148, %149 : vector<16x128xf32>
    %151 = math.tanh %150 : vector<16x128xf32>
    %152 = vector.broadcast %146 : f32 to vector<16x128xf32>
    %153 = arith.mulf %151, %152 : vector<16x128xf32>
    %154 = arith.addf %132, %153 : vector<16x128xf32>
    %c13 = arith.constant 13 : index
    %155 = memref.load %arg1[%c13] : memref<32xf32, #tpu.memory_space<smem>>
    %c13_32 = arith.constant 13 : index
    %156 = memref.load %arg2[%c13_32] : memref<32xf32, #tpu.memory_space<smem>>
    %c13_33 = arith.constant 13 : index
    %157 = memref.load %arg3[%c13_33] : memref<32xf32, #tpu.memory_space<smem>>
    %158 = vector.broadcast %155 : f32 to vector<16x128xf32>
    %159 = arith.mulf %6, %158 : vector<16x128xf32>
    %160 = vector.broadcast %156 : f32 to vector<16x128xf32>
    %161 = arith.addf %159, %160 : vector<16x128xf32>
    %162 = math.tanh %161 : vector<16x128xf32>
    %163 = vector.broadcast %157 : f32 to vector<16x128xf32>
    %164 = arith.mulf %162, %163 : vector<16x128xf32>
    %165 = arith.addf %143, %164 : vector<16x128xf32>
    %c14 = arith.constant 14 : index
    %166 = memref.load %arg1[%c14] : memref<32xf32, #tpu.memory_space<smem>>
    %c14_34 = arith.constant 14 : index
    %167 = memref.load %arg2[%c14_34] : memref<32xf32, #tpu.memory_space<smem>>
    %c14_35 = arith.constant 14 : index
    %168 = memref.load %arg3[%c14_35] : memref<32xf32, #tpu.memory_space<smem>>
    %169 = vector.broadcast %166 : f32 to vector<16x128xf32>
    %170 = arith.mulf %6, %169 : vector<16x128xf32>
    %171 = vector.broadcast %167 : f32 to vector<16x128xf32>
    %172 = arith.addf %170, %171 : vector<16x128xf32>
    %173 = math.tanh %172 : vector<16x128xf32>
    %174 = vector.broadcast %168 : f32 to vector<16x128xf32>
    %175 = arith.mulf %173, %174 : vector<16x128xf32>
    %176 = arith.addf %154, %175 : vector<16x128xf32>
    %c15 = arith.constant 15 : index
    %177 = memref.load %arg1[%c15] : memref<32xf32, #tpu.memory_space<smem>>
    %c15_36 = arith.constant 15 : index
    %178 = memref.load %arg2[%c15_36] : memref<32xf32, #tpu.memory_space<smem>>
    %c15_37 = arith.constant 15 : index
    %179 = memref.load %arg3[%c15_37] : memref<32xf32, #tpu.memory_space<smem>>
    %180 = vector.broadcast %177 : f32 to vector<16x128xf32>
    %181 = arith.mulf %6, %180 : vector<16x128xf32>
    %182 = vector.broadcast %178 : f32 to vector<16x128xf32>
    %183 = arith.addf %181, %182 : vector<16x128xf32>
    %184 = math.tanh %183 : vector<16x128xf32>
    %185 = vector.broadcast %179 : f32 to vector<16x128xf32>
    %186 = arith.mulf %184, %185 : vector<16x128xf32>
    %187 = arith.addf %165, %186 : vector<16x128xf32>
    %c16 = arith.constant 16 : index
    %188 = memref.load %arg1[%c16] : memref<32xf32, #tpu.memory_space<smem>>
    %c16_38 = arith.constant 16 : index
    %189 = memref.load %arg2[%c16_38] : memref<32xf32, #tpu.memory_space<smem>>
    %c16_39 = arith.constant 16 : index
    %190 = memref.load %arg3[%c16_39] : memref<32xf32, #tpu.memory_space<smem>>
    %191 = vector.broadcast %188 : f32 to vector<16x128xf32>
    %192 = arith.mulf %6, %191 : vector<16x128xf32>
    %193 = vector.broadcast %189 : f32 to vector<16x128xf32>
    %194 = arith.addf %192, %193 : vector<16x128xf32>
    %195 = math.tanh %194 : vector<16x128xf32>
    %196 = vector.broadcast %190 : f32 to vector<16x128xf32>
    %197 = arith.mulf %195, %196 : vector<16x128xf32>
    %198 = arith.addf %176, %197 : vector<16x128xf32>
    %c17 = arith.constant 17 : index
    %199 = memref.load %arg1[%c17] : memref<32xf32, #tpu.memory_space<smem>>
    %c17_40 = arith.constant 17 : index
    %200 = memref.load %arg2[%c17_40] : memref<32xf32, #tpu.memory_space<smem>>
    %c17_41 = arith.constant 17 : index
    %201 = memref.load %arg3[%c17_41] : memref<32xf32, #tpu.memory_space<smem>>
    %202 = vector.broadcast %199 : f32 to vector<16x128xf32>
    %203 = arith.mulf %6, %202 : vector<16x128xf32>
    %204 = vector.broadcast %200 : f32 to vector<16x128xf32>
    %205 = arith.addf %203, %204 : vector<16x128xf32>
    %206 = math.tanh %205 : vector<16x128xf32>
    %207 = vector.broadcast %201 : f32 to vector<16x128xf32>
    %208 = arith.mulf %206, %207 : vector<16x128xf32>
    %209 = arith.addf %187, %208 : vector<16x128xf32>
    %c18 = arith.constant 18 : index
    %210 = memref.load %arg1[%c18] : memref<32xf32, #tpu.memory_space<smem>>
    %c18_42 = arith.constant 18 : index
    %211 = memref.load %arg2[%c18_42] : memref<32xf32, #tpu.memory_space<smem>>
    %c18_43 = arith.constant 18 : index
    %212 = memref.load %arg3[%c18_43] : memref<32xf32, #tpu.memory_space<smem>>
    %213 = vector.broadcast %210 : f32 to vector<16x128xf32>
    %214 = arith.mulf %6, %213 : vector<16x128xf32>
    %215 = vector.broadcast %211 : f32 to vector<16x128xf32>
    %216 = arith.addf %214, %215 : vector<16x128xf32>
    %217 = math.tanh %216 : vector<16x128xf32>
    %218 = vector.broadcast %212 : f32 to vector<16x128xf32>
    %219 = arith.mulf %217, %218 : vector<16x128xf32>
    %220 = arith.addf %198, %219 : vector<16x128xf32>
    %c19 = arith.constant 19 : index
    %221 = memref.load %arg1[%c19] : memref<32xf32, #tpu.memory_space<smem>>
    %c19_44 = arith.constant 19 : index
    %222 = memref.load %arg2[%c19_44] : memref<32xf32, #tpu.memory_space<smem>>
    %c19_45 = arith.constant 19 : index
    %223 = memref.load %arg3[%c19_45] : memref<32xf32, #tpu.memory_space<smem>>
    %224 = vector.broadcast %221 : f32 to vector<16x128xf32>
    %225 = arith.mulf %6, %224 : vector<16x128xf32>
    %226 = vector.broadcast %222 : f32 to vector<16x128xf32>
    %227 = arith.addf %225, %226 : vector<16x128xf32>
    %228 = math.tanh %227 : vector<16x128xf32>
    %229 = vector.broadcast %223 : f32 to vector<16x128xf32>
    %230 = arith.mulf %228, %229 : vector<16x128xf32>
    %231 = arith.addf %209, %230 : vector<16x128xf32>
    %c20 = arith.constant 20 : index
    %232 = memref.load %arg1[%c20] : memref<32xf32, #tpu.memory_space<smem>>
    %c20_46 = arith.constant 20 : index
    %233 = memref.load %arg2[%c20_46] : memref<32xf32, #tpu.memory_space<smem>>
    %c20_47 = arith.constant 20 : index
    %234 = memref.load %arg3[%c20_47] : memref<32xf32, #tpu.memory_space<smem>>
    %235 = vector.broadcast %232 : f32 to vector<16x128xf32>
    %236 = arith.mulf %6, %235 : vector<16x128xf32>
    %237 = vector.broadcast %233 : f32 to vector<16x128xf32>
    %238 = arith.addf %236, %237 : vector<16x128xf32>
    %239 = math.tanh %238 : vector<16x128xf32>
    %240 = vector.broadcast %234 : f32 to vector<16x128xf32>
    %241 = arith.mulf %239, %240 : vector<16x128xf32>
    %242 = arith.addf %220, %241 : vector<16x128xf32>
    %c21 = arith.constant 21 : index
    %243 = memref.load %arg1[%c21] : memref<32xf32, #tpu.memory_space<smem>>
    %c21_48 = arith.constant 21 : index
    %244 = memref.load %arg2[%c21_48] : memref<32xf32, #tpu.memory_space<smem>>
    %c21_49 = arith.constant 21 : index
    %245 = memref.load %arg3[%c21_49] : memref<32xf32, #tpu.memory_space<smem>>
    %246 = vector.broadcast %243 : f32 to vector<16x128xf32>
    %247 = arith.mulf %6, %246 : vector<16x128xf32>
    %248 = vector.broadcast %244 : f32 to vector<16x128xf32>
    %249 = arith.addf %247, %248 : vector<16x128xf32>
    %250 = math.tanh %249 : vector<16x128xf32>
    %251 = vector.broadcast %245 : f32 to vector<16x128xf32>
    %252 = arith.mulf %250, %251 : vector<16x128xf32>
    %253 = arith.addf %231, %252 : vector<16x128xf32>
    %c22 = arith.constant 22 : index
    %254 = memref.load %arg1[%c22] : memref<32xf32, #tpu.memory_space<smem>>
    %c22_50 = arith.constant 22 : index
    %255 = memref.load %arg2[%c22_50] : memref<32xf32, #tpu.memory_space<smem>>
    %c22_51 = arith.constant 22 : index
    %256 = memref.load %arg3[%c22_51] : memref<32xf32, #tpu.memory_space<smem>>
    %257 = vector.broadcast %254 : f32 to vector<16x128xf32>
    %258 = arith.mulf %6, %257 : vector<16x128xf32>
    %259 = vector.broadcast %255 : f32 to vector<16x128xf32>
    %260 = arith.addf %258, %259 : vector<16x128xf32>
    %261 = math.tanh %260 : vector<16x128xf32>
    %262 = vector.broadcast %256 : f32 to vector<16x128xf32>
    %263 = arith.mulf %261, %262 : vector<16x128xf32>
    %264 = arith.addf %242, %263 : vector<16x128xf32>
    %c23 = arith.constant 23 : index
    %265 = memref.load %arg1[%c23] : memref<32xf32, #tpu.memory_space<smem>>
    %c23_52 = arith.constant 23 : index
    %266 = memref.load %arg2[%c23_52] : memref<32xf32, #tpu.memory_space<smem>>
    %c23_53 = arith.constant 23 : index
    %267 = memref.load %arg3[%c23_53] : memref<32xf32, #tpu.memory_space<smem>>
    %268 = vector.broadcast %265 : f32 to vector<16x128xf32>
    %269 = arith.mulf %6, %268 : vector<16x128xf32>
    %270 = vector.broadcast %266 : f32 to vector<16x128xf32>
    %271 = arith.addf %269, %270 : vector<16x128xf32>
    %272 = math.tanh %271 : vector<16x128xf32>
    %273 = vector.broadcast %267 : f32 to vector<16x128xf32>
    %274 = arith.mulf %272, %273 : vector<16x128xf32>
    %275 = arith.addf %253, %274 : vector<16x128xf32>
    %c24 = arith.constant 24 : index
    %276 = memref.load %arg1[%c24] : memref<32xf32, #tpu.memory_space<smem>>
    %c24_54 = arith.constant 24 : index
    %277 = memref.load %arg2[%c24_54] : memref<32xf32, #tpu.memory_space<smem>>
    %c24_55 = arith.constant 24 : index
    %278 = memref.load %arg3[%c24_55] : memref<32xf32, #tpu.memory_space<smem>>
    %279 = vector.broadcast %276 : f32 to vector<16x128xf32>
    %280 = arith.mulf %6, %279 : vector<16x128xf32>
    %281 = vector.broadcast %277 : f32 to vector<16x128xf32>
    %282 = arith.addf %280, %281 : vector<16x128xf32>
    %283 = math.tanh %282 : vector<16x128xf32>
    %284 = vector.broadcast %278 : f32 to vector<16x128xf32>
    %285 = arith.mulf %283, %284 : vector<16x128xf32>
    %286 = arith.addf %264, %285 : vector<16x128xf32>
    %c25 = arith.constant 25 : index
    %287 = memref.load %arg1[%c25] : memref<32xf32, #tpu.memory_space<smem>>
    %c25_56 = arith.constant 25 : index
    %288 = memref.load %arg2[%c25_56] : memref<32xf32, #tpu.memory_space<smem>>
    %c25_57 = arith.constant 25 : index
    %289 = memref.load %arg3[%c25_57] : memref<32xf32, #tpu.memory_space<smem>>
    %290 = vector.broadcast %287 : f32 to vector<16x128xf32>
    %291 = arith.mulf %6, %290 : vector<16x128xf32>
    %292 = vector.broadcast %288 : f32 to vector<16x128xf32>
    %293 = arith.addf %291, %292 : vector<16x128xf32>
    %294 = math.tanh %293 : vector<16x128xf32>
    %295 = vector.broadcast %289 : f32 to vector<16x128xf32>
    %296 = arith.mulf %294, %295 : vector<16x128xf32>
    %297 = arith.addf %275, %296 : vector<16x128xf32>
    %c26 = arith.constant 26 : index
    %298 = memref.load %arg1[%c26] : memref<32xf32, #tpu.memory_space<smem>>
    %c26_58 = arith.constant 26 : index
    %299 = memref.load %arg2[%c26_58] : memref<32xf32, #tpu.memory_space<smem>>
    %c26_59 = arith.constant 26 : index
    %300 = memref.load %arg3[%c26_59] : memref<32xf32, #tpu.memory_space<smem>>
    %301 = vector.broadcast %298 : f32 to vector<16x128xf32>
    %302 = arith.mulf %6, %301 : vector<16x128xf32>
    %303 = vector.broadcast %299 : f32 to vector<16x128xf32>
    %304 = arith.addf %302, %303 : vector<16x128xf32>
    %305 = math.tanh %304 : vector<16x128xf32>
    %306 = vector.broadcast %300 : f32 to vector<16x128xf32>
    %307 = arith.mulf %305, %306 : vector<16x128xf32>
    %308 = arith.addf %286, %307 : vector<16x128xf32>
    %c27 = arith.constant 27 : index
    %309 = memref.load %arg1[%c27] : memref<32xf32, #tpu.memory_space<smem>>
    %c27_60 = arith.constant 27 : index
    %310 = memref.load %arg2[%c27_60] : memref<32xf32, #tpu.memory_space<smem>>
    %c27_61 = arith.constant 27 : index
    %311 = memref.load %arg3[%c27_61] : memref<32xf32, #tpu.memory_space<smem>>
    %312 = vector.broadcast %309 : f32 to vector<16x128xf32>
    %313 = arith.mulf %6, %312 : vector<16x128xf32>
    %314 = vector.broadcast %310 : f32 to vector<16x128xf32>
    %315 = arith.addf %313, %314 : vector<16x128xf32>
    %316 = math.tanh %315 : vector<16x128xf32>
    %317 = vector.broadcast %311 : f32 to vector<16x128xf32>
    %318 = arith.mulf %316, %317 : vector<16x128xf32>
    %319 = arith.addf %297, %318 : vector<16x128xf32>
    %c28 = arith.constant 28 : index
    %320 = memref.load %arg1[%c28] : memref<32xf32, #tpu.memory_space<smem>>
    %c28_62 = arith.constant 28 : index
    %321 = memref.load %arg2[%c28_62] : memref<32xf32, #tpu.memory_space<smem>>
    %c28_63 = arith.constant 28 : index
    %322 = memref.load %arg3[%c28_63] : memref<32xf32, #tpu.memory_space<smem>>
    %323 = vector.broadcast %320 : f32 to vector<16x128xf32>
    %324 = arith.mulf %6, %323 : vector<16x128xf32>
    %325 = vector.broadcast %321 : f32 to vector<16x128xf32>
    %326 = arith.addf %324, %325 : vector<16x128xf32>
    %327 = math.tanh %326 : vector<16x128xf32>
    %328 = vector.broadcast %322 : f32 to vector<16x128xf32>
    %329 = arith.mulf %327, %328 : vector<16x128xf32>
    %330 = arith.addf %308, %329 : vector<16x128xf32>
    %c29 = arith.constant 29 : index
    %331 = memref.load %arg1[%c29] : memref<32xf32, #tpu.memory_space<smem>>
    %c29_64 = arith.constant 29 : index
    %332 = memref.load %arg2[%c29_64] : memref<32xf32, #tpu.memory_space<smem>>
    %c29_65 = arith.constant 29 : index
    %333 = memref.load %arg3[%c29_65] : memref<32xf32, #tpu.memory_space<smem>>
    %334 = vector.broadcast %331 : f32 to vector<16x128xf32>
    %335 = arith.mulf %6, %334 : vector<16x128xf32>
    %336 = vector.broadcast %332 : f32 to vector<16x128xf32>
    %337 = arith.addf %335, %336 : vector<16x128xf32>
    %338 = math.tanh %337 : vector<16x128xf32>
    %339 = vector.broadcast %333 : f32 to vector<16x128xf32>
    %340 = arith.mulf %338, %339 : vector<16x128xf32>
    %341 = arith.addf %319, %340 : vector<16x128xf32>
    %c30 = arith.constant 30 : index
    %342 = memref.load %arg1[%c30] : memref<32xf32, #tpu.memory_space<smem>>
    %c30_66 = arith.constant 30 : index
    %343 = memref.load %arg2[%c30_66] : memref<32xf32, #tpu.memory_space<smem>>
    %c30_67 = arith.constant 30 : index
    %344 = memref.load %arg3[%c30_67] : memref<32xf32, #tpu.memory_space<smem>>
    %345 = vector.broadcast %342 : f32 to vector<16x128xf32>
    %346 = arith.mulf %6, %345 : vector<16x128xf32>
    %347 = vector.broadcast %343 : f32 to vector<16x128xf32>
    %348 = arith.addf %346, %347 : vector<16x128xf32>
    %349 = math.tanh %348 : vector<16x128xf32>
    %350 = vector.broadcast %344 : f32 to vector<16x128xf32>
    %351 = arith.mulf %349, %350 : vector<16x128xf32>
    %352 = arith.addf %330, %351 : vector<16x128xf32>
    %c31 = arith.constant 31 : index
    %353 = memref.load %arg1[%c31] : memref<32xf32, #tpu.memory_space<smem>>
    %c31_68 = arith.constant 31 : index
    %354 = memref.load %arg2[%c31_68] : memref<32xf32, #tpu.memory_space<smem>>
    %c31_69 = arith.constant 31 : index
    %355 = memref.load %arg3[%c31_69] : memref<32xf32, #tpu.memory_space<smem>>
    %356 = vector.broadcast %353 : f32 to vector<16x128xf32>
    %357 = arith.mulf %6, %356 : vector<16x128xf32>
    %358 = vector.broadcast %354 : f32 to vector<16x128xf32>
    %359 = arith.addf %357, %358 : vector<16x128xf32>
    %360 = math.tanh %359 : vector<16x128xf32>
    %361 = vector.broadcast %355 : f32 to vector<16x128xf32>
    %362 = arith.mulf %360, %361 : vector<16x128xf32>
    %363 = arith.addf %341, %362 : vector<16x128xf32>
    %364 = arith.addf %352, %363 : vector<16x128xf32>
    %c0_70 = arith.constant 0 : index
    %365 = memref.load %arg4[%c0_70] : memref<1xf32, #tpu.memory_space<smem>>
    %366 = vector.broadcast %365 : f32 to vector<16x128xf32>
    %367 = arith.addf %364, %366 : vector<16x128xf32>
    %368 = math.tanh %367 : vector<16x128xf32>
    %369 = arith.mulf %9, %368 : vector<16x128xf32>
    %c0_71 = arith.constant 0 : index
    %c0_72 = arith.constant 0 : index
    %370 = vector.load %arg7[%c0_71, %c0_72] : memref<32x16xf32, #tpu.memory_space<vmem>>, vector<32x16xf32>
    %cst_73 = arith.constant dense<0.000000e+00> : vector<32x128xf32>
    %371 = tpu.matmul %370, %369, %cst_73 {dimension_numbers = #tpu.dot_dimension_numbers<[1], [0], [0], [1], [0, 0, 1, 1], [], []>} : vector<32x16xf32>, vector<16x128xf32>, vector<32x128xf32> -> vector<32x128xf32>
    %c0_74 = arith.constant 0 : index
    %c0_75 = arith.constant 0 : index
    %372 = vector.load %arg8[%c0_74, %c0_75] : memref<32x1xf32, #tpu.memory_space<vmem>>, vector<32x1xf32>
    %373 = vector.broadcast %372 : vector<32x1xf32> to vector<32x128xf32>
    %374 = arith.addf %371, %373 : vector<32x128xf32>
    %375 = math.tanh %374 : vector<32x128xf32>
    %c0_76 = arith.constant 0 : index
    %c0_77 = arith.constant 0 : index
    %376 = vector.load %arg9[%c0_76, %c0_77] : memref<32x32xf32, #tpu.memory_space<vmem>>, vector<32x32xf32>
    %cst_78 = arith.constant dense<0.000000e+00> : vector<32x128xf32>
    %377 = tpu.matmul %376, %375, %cst_78 {dimension_numbers = #tpu.dot_dimension_numbers<[1], [0], [0], [1], [0, 0, 1, 1], [], []>} : vector<32x32xf32>, vector<32x128xf32>, vector<32x128xf32> -> vector<32x128xf32>
    %c0_79 = arith.constant 0 : index
    %c0_80 = arith.constant 0 : index
    %378 = vector.load %arg10[%c0_79, %c0_80] : memref<32x1xf32, #tpu.memory_space<vmem>>, vector<32x1xf32>
    %379 = vector.broadcast %378 : vector<32x1xf32> to vector<32x128xf32>
    %380 = arith.addf %377, %379 : vector<32x128xf32>
    %381 = math.tanh %380 : vector<32x128xf32>
    %c0_81 = arith.constant 0 : index
    %c0_82 = arith.constant 0 : index
    %382 = vector.load %arg11[%c0_81, %c0_82] : memref<1x32xf32, #tpu.memory_space<vmem>>, vector<1x32xf32>
    %cst_83 = arith.constant dense<0.000000e+00> : vector<1x128xf32>
    %383 = tpu.matmul %382, %381, %cst_83 {dimension_numbers = #tpu.dot_dimension_numbers<[1], [0], [0], [1], [0, 0, 1, 1], [], []>} : vector<1x32xf32>, vector<32x128xf32>, vector<1x128xf32> -> vector<1x128xf32>
    %c0_84 = arith.constant 0 : index
    %384 = memref.load %arg5[%c0_84] : memref<1xf32, #tpu.memory_space<smem>>
    %385 = vector.broadcast %384 : f32 to vector<1x128xf32>
    %386 = arith.addf %383, %385 : vector<1x128xf32>
    %387 = math.tanh %386 : vector<1x128xf32>
    %c0_85 = arith.constant 0 : index
    %388 = arith.index_cast %3 : i32 to index
    %389 = vector.load %arg12[%c0_85, %388] : memref<1x128xf32, #tpu.memory_space<vmem>>, vector<1x128xf32>
    tpu.vector_store %arg12[%c0_85, %388], %387 {strides = array<i32>} : memref<1x128xf32, #tpu.memory_space<vmem>>, vector<1x128xf32>,
    %c1_i32_86 = arith.constant 1 : i32
    return
  }
  func.func @transform_0(%arg0: i32) -> i32 {
    %c0_i32 = arith.constant 0 : i32
    %c0_i32_0 = arith.constant 0 : i32
    return %c0_i32 : i32
  }
  func.func @transform_1(%arg0: i32) -> i32 {
    %c0_i32 = arith.constant 0 : i32
    %c0_i32_0 = arith.constant 0 : i32
    return %c0_i32 : i32
  }
  func.func @transform_2(%arg0: i32) -> i32 {
    %c0_i32 = arith.constant 0 : i32
    %c0_i32_0 = arith.constant 0 : i32
    return %c0_i32 : i32
  }
  func.func @transform_3(%arg0: i32) -> i32 {
    %c0_i32 = arith.constant 0 : i32
    %c0_i32_0 = arith.constant 0 : i32
    return %c0_i32 : i32
  }
  func.func @transform_4(%arg0: i32) -> i32 {
    %c0_i32 = arith.constant 0 : i32
    %c0_i32_0 = arith.constant 0 : i32
    return %c0_i32 : i32
  }
  func.func @transform_5(%arg0: i32) -> (i32, i32, i32) {
    %c0_i32 = arith.constant 0 : i32
    %c0_i32_0 = arith.constant 0 : i32
    %c0_i32_1 = arith.constant 0 : i32
    return %c0_i32, %c0_i32_0, %arg0 : i32, i32, i32
  }
  func.func @transform_6(%arg0: i32) -> (i32, i32) {
    %c0_i32 = arith.constant 0 : i32
    %c0_i32_0 = arith.constant 0 : i32
    %c0_i32_1 = arith.constant 0 : i32
    return %c0_i32, %c0_i32_0 : i32, i32
  }
  func.func @transform_7(%arg0: i32) -> (i32, i32) {
    %c0_i32 = arith.constant 0 : i32
    %c0_i32_0 = arith.constant 0 : i32
    %c0_i32_1 = arith.constant 0 : i32
    return %c0_i32, %c0_i32_0 : i32, i32
  }
  func.func @transform_8(%arg0: i32) -> (i32, i32) {
    %c0_i32 = arith.constant 0 : i32
    %c0_i32_0 = arith.constant 0 : i32
    %c0_i32_1 = arith.constant 0 : i32
    return %c0_i32, %c0_i32_0 : i32, i32
  }
  func.func @transform_9(%arg0: i32) -> (i32, i32) {
    %c0_i32 = arith.constant 0 : i32
    %c0_i32_0 = arith.constant 0 : i32
    %c0_i32_1 = arith.constant 0 : i32
    return %c0_i32, %c0_i32_0 : i32, i32
  }
  func.func @transform_10(%arg0: i32) -> (i32, i32) {
    %c0_i32 = arith.constant 0 : i32
    %c0_i32_0 = arith.constant 0 : i32
    %c0_i32_1 = arith.constant 0 : i32
    return %c0_i32, %c0_i32_0 : i32, i32
  }
  func.func @transform_11(%arg0: i32) -> (i32, i32) {
    %c0_i32 = arith.constant 0 : i32
    %c0_i32_0 = arith.constant 0 : i32
    return %c0_i32, %arg0 : i32, i32
  }
}

</mosaic_0001>

<bundles_post_ra>
// kernel: tpu_custom_call.1
= control target key start
LH: loop header
LB: loop body
LE: loop exit
PB: predicated region body
PF: predicated region fallthrough
CT: control target
= control target key end

     0   :  { %18 = vsyncpa [#allocation6], 0  ;;  %s1925_s0 = inlined_call_operand.vmem [shape: f32[32], index: 0, kind: input, shape index: {}]   ;;  %s1926_s1 = inlined_call_operand.vmem [shape: f32[32], index: 1, kind: input, shape index: {}]   ;;  %s1927_s2 = inlined_call_operand.vmem [shape: f32[32], index: 2, kind: input, shape index: {}]   ;;  %s1928_s3 = inlined_call_operand.<no memory space> [shape: f32[1], index: 3, kind: input, shape index: {}]   ;;  %s1929_s4 = inlined_call_operand.<no memory space> [shape: f32[1], index: 4, kind: input, shape index: {}]   ;;  %s1930_s5 = inlined_call_operand.vmem [shape: f32[2,16,128], index: 5, kind: input, shape index: {}]   ;;  %s1931_s6 = inlined_call_operand.vmem [shape: f32[32,16], index: 6, kind: input, shape index: {}]   ;;  %s1932_s7 = inlined_call_operand.vmem [shape: f32[32,1], index: 7, kind: input, shape index: {}]   ;;  %s1933_s8 = inlined_call_operand.vmem [shape: f32[32,32], index: 8, kind: input, shape index: {}]   ;;  %s1934_s9 = inlined_call_operand.vmem [shape: f32[32,1], index: 9, kind: input, shape index: {}]   ;;  %s1935_s10 = inlined_call_operand.vmem [shape: f32[1,32], index: 10, kind: input, shape index: {}]   ;;  %s1936_s11 = inlined_call_operand.hbm [shape: f32[1,128], index: 11, kind: output, shape index: {}]  }
   0x1   :  { %19 = vsyncpa [#allocation8], 0  ;;  %s37_s19 = sshll.u32 %s1926_s1, 4  ;;  %s38_s19 = int_to_ptr.vmem [resolvable:$true] %s37_s19 }
   0x2   :  { %20 = vsyncpa [#allocation5], 0  ;;  %s27_s22 = sshll.u32 %s1925_s0, 4  ;;  %s1298_s23 = scalar_lea.vmem %s38_s19, 16  ;;  %s28_s22 = int_to_ptr.vmem [resolvable:$true] %s27_s22 }
   0x3   :  { %p1299_p0 = scmp.ne.s32.totalorder %s38_s19, %s1298_s23  ;;  %p1303_p1 = scmp.lt.s32.totalorder %s38_s19, %s38_s19 }
   0x4   :  { %p1304_p2 = scmp.lt.s32.totalorder %s1298_s23, %s1298_s23 }
   0x6   :  { %p1305_p3 = por %p1304_p2, %p1303_p1 }
   0x8   :  { %p1306_p4 = pnand %p1305_p3, %p1299_p0 }
   0xa   :  { %1309 = shalt.err (!%p1306_p4)
}
   0xb   :  { %s1362_s24 = smov [#allocation7]   ;;  %s1310_s25 = scalar_lea.vmem %s28_s22, 16 }
   0xc   :  { %40 = dma.vmem_to_smem %s38_s19, 16, %s1362_s24, [#allocation8]  }
   0xd   :  { %p1311_p5 = scmp.ne.s32.totalorder %s28_s22, %s1310_s25  ;;  %p1315_p6 = scmp.lt.s32.totalorder %s28_s22, %s28_s22 }
   0xe   :  { %p1316_p7 = scmp.lt.s32.totalorder %s1310_s25, %s1310_s25 }
  0x10   :  { %p1317_p8 = por %p1316_p7, %p1315_p6 }
  0x12   :  { %p1318_p9 = pnand %p1317_p8, %p1311_p5 }
  0x14   :  { %1321 = shalt.err (!%p1318_p9)
}
  0x15   :  { %s1363_s1 = smov [#allocation4]   ;;  %s47_s27 = sshll.u32 %s1927_s2, 4  ;;  %s48_s27 = int_to_ptr.vmem [resolvable:$true] %s47_s27 }
  0x16   :  { %30 = dma.vmem_to_smem %s28_s22, 16, %s1363_s1, [#allocation6]  }
  0x17   :  { %s1322_s28 = scalar_lea.vmem %s48_s27, 16  ;;  %p1327_p11 = scmp.lt.s32.totalorder %s48_s27, %s48_s27 }
  0x18   :  { %p1323_p10 = scmp.ne.s32.totalorder %s48_s27, %s1322_s28  ;;  %p1328_p12 = scmp.lt.s32.totalorder %s1322_s28, %s1322_s28 }
  0x1a   :  { %p1329_p13 = por %p1328_p12, %p1327_p11 }
  0x1c   :  { %p1330_p0 = pnand %p1329_p13, %p1323_p10 }
  0x1e   :  { %1333 = shalt.err (!%p1330_p0)
}
  0x1f   :  { %s1364_s29 = smov [#allocation9]  }
  0x20   :  { %50 = dma.vmem_to_smem %s48_s27, 16, %s1364_s29, [#allocation8]  }
  0x21   :  { %1356 = dma.done.wait [#allocation6], 16  }
  0x22   :  { %1357 = vsyncadd [#allocation6], 4294967280 }
  0x23   :  { %1358 = dma.done.wait [#allocation8], 32  }
  0x24   :  { %1359 = vsyncadd [#allocation8], 4294967264 }
  0x25   :  { %76 = sfence }
  0x26   :  { %s83_s30 = sld [smem:[#allocation4]]  ;;  %s962_s13 = sld [smem:[#allocation4 + $0x1]]  ;;  %v1444_v0 = vld [vmem:[%s1930_s5] sm:$0xff]  ;;  %v1449_v1 = vld [vmem:[%s1930_s5 + $0x8] sm:$0xff]  ;;  %vm633_vm0 = vcmask 130048   ;;  %vm763_vm1 = vcmask 261120  }
  0x27   :  { %s84_s12 = sld [smem:[#allocation7]]  ;;  %s1439_s14 = sld [smem:[#allocation7 + $0x1]]  ;;  %vm1367_vm2 = vmmov 0  }
  0x28   :  { %s965_s2 = sld [smem:[#allocation4 + $0x2]]  ;;  %s968_s20 = sld [smem:[#allocation4 + $0x3]] }
  0x29   :  { %s1451_s19 = sld [smem:[#allocation7 + $0x2]]  ;;  %s1453_s21 = sld [smem:[#allocation7 + $0x3]] }
  0x2a   :  { %s1455_s22 = sld [smem:[#allocation4 + $0x4]]  ;;  %s1463_s24 = sld [smem:[#allocation4 + $0x5]] }
  0x2b   :  { %s1460_s23 = sld [smem:[#allocation7 + $0x4]]  ;;  %s1465_s25 = sld [smem:[#allocation7 + $0x5]] }
  0x2c   :  { %v86_v2 = vstv %s83_s30  ;;  %v102_v6 = vstv %s962_s13  ;;  %s1470_s1 = sld [smem:[#allocation4 + $0x6]]  ;;  %s1478_s26 = sld [smem:[#allocation4 + $0x7]] }
  0x2d   :  { %v87_v3 = vmul.f32 %v86_v2, %v1444_v0  ;;  %v88_v4 = vmul.f32 %v86_v2, %v1449_v1  ;;  %v89_v5 = vstv %s84_s12  ;;  %v105_v7 = vstv %s1439_s14  ;;  %s1472_s0 = sld [smem:[#allocation7 + $0x6]]  ;;  %s1481_s27 = sld [smem:[#allocation7 + $0x7]] }
  0x2e   :  { %v103_v10 = vmul.f32 %v102_v6, %v1444_v0  ;;  %v104_v11 = vmul.f32 %v102_v6, %v1449_v1  ;;  %v118_v12 = vstv %s965_s2  ;;  %v134_v17 = vstv %s968_s20  ;;  %s1486_s28 = sld [smem:[#allocation9]]  ;;  %s1492_s30 = sld [smem:[#allocation9 + $0x1]] }
  0x2f   :  { %v90_v8 = vadd.f32 %v89_v5, %v87_v3  ;;  %v91_v9 = vadd.f32 %v89_v5, %v88_v4  ;;  %v121_v13 = vstv %s1451_s19  ;;  %v119_v15 = vmul.f32 %v118_v12, %v1444_v0  ;;  %s1490_s29 = sld [smem:[#allocation4 + $0x8]]  ;;  %s1494_s12 = sld [smem:[#allocation9 + $0x2]] }
  0x30   :  { %v106_v14 = vadd.f32 %v105_v7, %v103_v10  ;;  %v120_v16 = vmul.f32 %v118_v12, %v1449_v1  ;;  %v137_v18 = vstv %s1453_s21  ;;  %v135_v20 = vmul.f32 %v134_v17, %v1444_v0  ;;  %s1498_s13 = sld [smem:[#allocation9 + $0x3]]  ;;  %s1503_s14 = sld [smem:[#allocation7 + $0x8]] }
  0x31   :  { %1146 = vtanh.f32 %v90_v8  ;;  %v122_v19 = vadd.f32 %v121_v13, %v119_v15  ;;  %v136_v21 = vmul.f32 %v134_v17, %v1449_v1  ;;  %v107_v22 = vadd.f32 %v105_v7, %v104_v11  ;;  %s1507_s2 = sld [smem:[#allocation4 + $0x9]]  ;;  %s1511_s15 = sld [smem:[#allocation9 + $0x4]] }
  0x32   :  { %1148 = vtanh.f32 %v91_v9  ;;  %v123_v23 = vadd.f32 %v121_v13, %v120_v16  ;;  %v150_v24 = vstv %s1455_s22  ;;  %v138_v25 = vadd.f32 %v137_v18, %v135_v20  ;;  %s1514_s16 = sld [smem:[#allocation7 + $0x9]]  ;;  %s1516_s17 = sld [smem:[#allocation9 + $0x5]] }
  0x33   :  { %1150 = vtanh.f32 %v106_v14  ;;  %v139_v26 = vadd.f32 %v137_v18, %v136_v21  ;;  %v151_v27 = vmul.f32 %v150_v24, %v1444_v0  ;;  %v152_v28 = vmul.f32 %v150_v24, %v1449_v1  ;;  %s1518_s18 = sld [smem:[#allocation4 + $0xa]]  ;;  %s1521_s19 = sld [smem:[#allocation9 + $0x6]] }
  0x34   :  { %1152 = vtanh.f32 %v122_v19  ;;  %v153_v29 = vstv %s1460_s23  ;;  %v166_v31 = vstv %s1463_s24  ;;  %v169_v32 = vstv %s1465_s25  ;;  %s1528_s20 = sld [smem:[#allocation9 + $0x7]]  ;;  %s1532_s21 = sld [smem:[#allocation7 + $0xa]] }
  0x35   :  { %1154 = vtanh.f32 %v123_v23  ;;  %v154_v30 = vadd.f32 %v153_v29, %v151_v27  ;;  %v155_v33 = vadd.f32 %v153_v29, %v152_v28  ;;  %v167_v34 = vmul.f32 %v166_v31, %v1444_v0  ;;  %s1535_s22 = sld [smem:[#allocation4 + $0xb]]  ;;  %s1537_s23 = sld [smem:[#allocation9 + $0x8]] }
  0x36   :  { %1156 = vtanh.f32 %v138_v25  ;;  %v168_v35 = vmul.f32 %v166_v31, %v1449_v1  ;;  %v182_v36 = vstv %s1470_s1  ;;  %v185_v37 = vstv %s1472_s0  ;;  %s1539_s24 = sld [smem:[#allocation9 + $0x9]]  ;;  %s1547_s25 = sld [smem:[#allocation4 + $0xc]] }
  0x37   :  { %1158 = vtanh.f32 %v107_v22  ;;  %v170_v38 = vadd.f32 %v169_v32, %v167_v34  ;;  %v183_v40 = vmul.f32 %v182_v36, %v1444_v0  ;;  %v184_v41 = vmul.f32 %v182_v36, %v1449_v1  ;;  %s1550_s1 = sld [smem:[#allocation7 + $0xb]]  ;;  %s1552_s0 = sld [smem:[#allocation9 + $0xa]] }
  0x38   :  { %1160 = vtanh.f32 %v139_v26  ;;  %v171_v39 = vadd.f32 %v169_v32, %v168_v35  ;;  %v198_v42 = vstv %s1478_s26  ;;  %v201_v46 = vstv %s1481_s27  ;;  %s1554_s26 = sld [smem:[#allocation4 + $0xd]]  ;;  %s1557_s27 = sld [smem:[#allocation7 + $0xc]] }
  0x39   :  { %1162 = vtanh.f32 %v154_v30  ;;  %v186_v44 = vadd.f32 %v185_v37, %v183_v40  ;;  %v199_v45 = vmul.f32 %v198_v42, %v1444_v0  ;;  %v187_v48 = vadd.f32 %v185_v37, %v184_v41 }
  0x3a   :  { %1164 = vtanh.f32 %v155_v33  ;;  %v200_v49 = vmul.f32 %v198_v42, %v1449_v1  ;;  %v94_v52 = vstv %s1486_s28  ;;  %v214_v54 = vstv %s1490_s29  ;;  %s1563_s28 = sld [smem:[#allocation7 + $0xd]]  ;;  %s1565_s29 = sld [smem:[#allocation4 + $0xe]] }
  0x3b   :  { %v1147_v43 = vpop.eup %1146  ;;  %1166 = vtanh.f32 %v170_v38  ;;  %v202_v53 = vadd.f32 %v201_v46, %v199_v45  ;;  %v110_v56 = vstv %s1492_s30  ;;  %v126_v57 = vstv %s1494_s12  ;;  %s1569_s30 = sld [smem:[#allocation9 + $0xb]]  ;;  %s1571_s12 = sld [smem:[#allocation7 + $0xe]] }
  0x3c   :  { %v1149_v47 = vpop.eup %1148  ;;  %1168 = vtanh.f32 %v171_v39  ;;  %v203_v58 = vadd.f32 %v201_v46, %v200_v49  ;;  %v142_v60 = vstv %s1498_s13  ;;  %v215_v61 = vmul.f32 %v214_v54, %v1444_v0  ;;  %s1577_s13 = sld [smem:[#allocation9 + $0xc]] }
  0x3d   :  { %v1151_v50 = vpop.eup %1150  ;;  %1170 = vtanh.f32 %v186_v44  ;;  %v95_v63 = vmul.f32 %v1147_v43, %v94_v52  ;;  %v96_v2 = vmul.f32 %v1149_v47, %v94_v52  ;;  %v216_v3 = vmul.f32 %v214_v54, %v1449_v1 }
  0x3e   :  { %v1153_v51 = vpop.eup %1152  ;;  %1172 = vtanh.f32 %v187_v48  ;;  %v217_v4 = vstv %s1503_s14  ;;  %v111_v6 = vmul.f32 %v1151_v50, %v110_v56  ;;  %v230_v8 = vstv %s1507_s2  ;;  %s1582_s14 = sld [smem:[#allocation4 + $0xf]] }
  0x3f   :  { %v1155_v55 = vpop.eup %1154  ;;  %v127_v7 = vmul.f32 %v1153_v51, %v126_v57  ;;  %1174 = vtanh.f32 %v202_v53  ;;  %v231_v12 = vmul.f32 %v230_v8, %v1444_v0  ;;  %v158_v14 = vstv %s1511_s15  ;;  %s1584_s2 = sld [smem:[#allocation7 + $0xf]]  ;;  %s1591_s15 = sld [smem:[#allocation4 + $0x10]] }
  0x40   :  { %v1157_v59 = vpop.eup %1156  ;;  %v128_v10 = vmul.f32 %v1155_v55, %v126_v57  ;;  %1176 = vtanh.f32 %v203_v58  ;;  %v218_v15 = vadd.f32 %v217_v4, %v215_v61  ;;  %v233_v16 = vstv %s1514_s16  ;;  %s1593_s16 = sld [smem:[#allocation7 + $0x10]] }
  0x41   :  { %v1159_v62 = vpop.eup %1158  ;;  %v143_v11 = vmul.f32 %v1157_v59, %v142_v60  ;;  %v174_v18 = vstv %s1516_s17  ;;  %v219_v19 = vadd.f32 %v217_v4, %v216_v3  ;;  %v232_v20 = vmul.f32 %v230_v8, %v1449_v1  ;;  %s1599_s17 = sld [smem:[#allocation4 + $0x11]] }
  0x42   :  { %v1161_v5 = vpop.eup %1160  ;;  %v246_v21 = vstv %s1518_s18  ;;  %v112_v22 = vmul.f32 %v1159_v62, %v110_v56  ;;  %v129_v23 = vadd.f32 %v127_v7, %v95_v63  ;;  %v190_v25 = vstv %s1521_s19  ;;  %s1603_s18 = sld [smem:[#allocation7 + $0x11]]  ;;  %s1605_s19 = sld [smem:[#allocation9 + $0xd]] }
  0x43   :  { %v1163_v9 = vpop.eup %1162  ;;  %v144_v24 = vmul.f32 %v1161_v5, %v142_v60  ;;  %v130_v27 = vadd.f32 %v128_v10, %v96_v2  ;;  %v145_v28 = vadd.f32 %v143_v11, %v111_v6  ;;  %v234_v30 = vadd.f32 %v233_v16, %v231_v12 }
  0x44   :  { %v1165_v13 = vpop.eup %1164  ;;  %v159_v29 = vmul.f32 %v1163_v9, %v158_v14  ;;  %1178 = vtanh.f32 %v218_v15  ;;  %v247_v33 = vmul.f32 %v246_v21, %v1444_v0  ;;  %v206_v35 = vstv %s1528_s20  ;;  %s1611_s20 = sld [smem:[#allocation4 + $0x12]] }
  0x45   :  { %v1167_v17 = vpop.eup %1166  ;;  %v160_v31 = vmul.f32 %v1165_v13, %v158_v14  ;;  %1180 = vtanh.f32 %v219_v19  ;;  %v235_v36 = vadd.f32 %v233_v16, %v232_v20  ;;  %v249_v37 = vstv %s1532_s21  ;;  %s1615_s21 = sld [smem:[#allocation9 + $0xe]] }
  0x46   :  { %v1169_v26 = vpop.eup %1168  ;;  %v175_v32 = vmul.f32 %v1167_v17, %v174_v18  ;;  %v146_v39 = vadd.f32 %v144_v24, %v112_v22  ;;  %v248_v41 = vmul.f32 %v246_v21, %v1449_v1  ;;  %v262_v42 = vstv %s1535_s22  ;;  %s1621_s22 = sld [smem:[#allocation7 + $0x12]] }
  0x47   :  { %v1171_v34 = vpop.eup %1170  ;;  %v176_v40 = vmul.f32 %v1169_v26, %v174_v18  ;;  %v161_v43 = vadd.f32 %v159_v29, %v129_v23  ;;  %v222_v44 = vstv %s1537_s23  ;;  %1182 = vtanh.f32 %v234_v30  ;;  %s1625_s23 = sld [smem:[#allocation9 + $0xf]] }
  0x48   :  { %v1173_v38 = vpop.eup %1172  ;;  %v238_v45 = vstv %s1539_s24  ;;  %v162_v47 = vadd.f32 %v160_v31, %v130_v27  ;;  %v177_v48 = vadd.f32 %v175_v32, %v145_v28  ;;  %v191_v49 = vmul.f32 %v1171_v34, %v190_v25  ;;  %s1634_s24 = sld [smem:[#allocation7 + $0x13]] }
  0x49   :  { %v1175_v46 = vpop.eup %1174  ;;  %v250_v50 = vadd.f32 %v249_v37, %v247_v33  ;;  %v192_v52 = vmul.f32 %v1173_v38, %v190_v25  ;;  %1184 = vtanh.f32 %v235_v36  ;;  %v263_v53 = vmul.f32 %v262_v42, %v1444_v0 }
  0x4a   :  { %v1177_v51 = vpop.eup %1176  ;;  %v278_v54 = vstv %s1547_s25  ;;  %v178_v55 = vadd.f32 %v176_v40, %v146_v39  ;;  %v251_v56 = vadd.f32 %v249_v37, %v248_v41  ;;  %v264_v57 = vmul.f32 %v262_v42, %v1449_v1  ;;  %s1628_s25 = sld [smem:[#allocation4 + $0x13]] }
  0x4b   :  { %v265_v58 = vstv %s1550_s1  ;;  %v207_v59 = vmul.f32 %v1175_v46, %v206_v35  ;;  %v254_v60 = vstv %s1552_s0  ;;  %v279_v61 = vmul.f32 %v278_v54, %v1444_v0  ;;  %s1640_s1 = sld [smem:[#allocation4 + $0x14]]  ;;  %s1656_s0 = sld [smem:[#allocation4 + $0x15]] }
  0x4c   :  { %v294_v62 = vstv %s1554_s26  ;;  %v208_v63 = vmul.f32 %v1177_v51, %v206_v35  ;;  %1186 = vtanh.f32 %v250_v50  ;;  %v280_v2 = vmul.f32 %v278_v54, %v1449_v1  ;;  %s1647_s26 = sld [smem:[#allocation9 + $0x10]] }
  0x4d   :  { %v281_v3 = vstv %s1557_s27  ;;  %v193_v4 = vadd.f32 %v191_v49, %v161_v43  ;;  %v1588_v5 = vadd.f32 %v192_v52, %v162_v47  ;;  %v266_v6 = vadd.f32 %v265_v58, %v263_v53  ;;  %s1649_s27 = sld [smem:[#allocation7 + $0x14]] }
  0x4e   :  { %v295_v7 = vmul.f32 %v294_v62, %v1444_v0  ;;  %v1179_v8 = vpop.eup %1178  ;;  %v267_v9 = vadd.f32 %v265_v58, %v264_v57  ;;  %v296_v10 = vmul.f32 %v294_v62, %v1449_v1  ;;  %v297_v11 = vstv %s1563_s28  ;;  %s1651_s28 = sld [smem:[#allocation9 + $0x11]] }
  0x4f   :  { %v310_v12 = vstv %s1565_s29  ;;  %v1181_v13 = vpop.eup %1180  ;;  %v209_v14 = vadd.f32 %v207_v59, %v177_v48  ;;  %1188 = vtanh.f32 %v251_v56  ;;  %v270_v15 = vstv %s1569_s30  ;;  %s1664_s29 = sld [smem:[#allocation9 + $0x12]]  ;;  %s1674_s30 = sld [smem:[#allocation7 + $0x15]] }
  0x50   :  { %v282_v16 = vadd.f32 %v281_v3, %v279_v61  ;;  %v210_v17 = vadd.f32 %v208_v63, %v178_v55  ;;  %v283_v18 = vadd.f32 %v281_v3, %v280_v2  ;;  %v311_v19 = vmul.f32 %v310_v12, %v1444_v0 }
  0x51   :  { %v313_v20 = vstv %s1571_s12  ;;  %v1183_v21 = vpop.eup %1182  ;;  %v223_v22 = vmul.f32 %v1179_v8, %v222_v44  ;;  %1190 = vtanh.f32 %v266_v6  ;;  %v298_v23 = vadd.f32 %v297_v11, %v295_v7  ;;  %s1670_s12 = sld [smem:[#allocation9 + $0x13]] }
  0x52   :  { %v312_v24 = vmul.f32 %v310_v12, %v1449_v1  ;;  %v224_v25 = vmul.f32 %v1181_v13, %v222_v44  ;;  %1192 = vtanh.f32 %v267_v9  ;;  %v286_v26 = vstv %s1577_s13  ;;  %s1690_s13 = sld [smem:[#allocation9 + $0x15]] }
  0x53   :  { %v299_v27 = vadd.f32 %v297_v11, %v296_v10  ;;  %v1185_v28 = vpop.eup %1184  ;;  %1194 = vtanh.f32 %v282_v16  ;;  %v314_v29 = vadd.f32 %v313_v20, %v311_v19  ;;  %v326_v30 = vstv %s1582_s14  ;;  %s1678_s14 = sld [smem:[#allocation9 + $0x14]] }
  0x54   :  { %v329_v31 = vstv %s1584_s2  ;;  %v239_v32 = vmul.f32 %v1183_v21, %v238_v45  ;;  %1196 = vtanh.f32 %v283_v18  ;;  %v327_v33 = vmul.f32 %v326_v30, %v1444_v0  ;;  %s1680_s2 = sld [smem:[#allocation4 + $0x16]] }
  0x55   :  { %v328_v34 = vmul.f32 %v326_v30, %v1449_v1  ;;  %1198 = vtanh.f32 %v298_v23  ;;  %v315_v35 = vadd.f32 %v313_v20, %v312_v24  ;;  %v342_v36 = vstv %s1591_s15  ;;  %s1683_s15 = sld [smem:[#allocation4 + $0x17]] }
  0x56   :  { %v345_v37 = vstv %s1593_s16  ;;  %v1187_v38 = vpop.eup %1186  ;;  %v240_v39 = vmul.f32 %v1185_v28, %v238_v45  ;;  %1200 = vtanh.f32 %v299_v27  ;;  %v330_v40 = vadd.f32 %v329_v31, %v327_v33  ;;  %s1692_s16 = sld [smem:[#allocation7 + $0x16]] }
  0x57   :  { %v343_v41 = vmul.f32 %v342_v36, %v1444_v0  ;;  %1202 = vtanh.f32 %v314_v29  ;;  %v331_v42 = vadd.f32 %v329_v31, %v328_v34  ;;  %v344_v43 = vmul.f32 %v342_v36, %v1449_v1 }
  0x58   :  { %v358_v44 = vstv %s1599_s17  ;;  %v225_v46 = vadd.f32 %v223_v22, %v193_v4  ;;  %v361_v45 = vstv %s1603_s18  ;;  %v226_v50 = vadd.f32 %v224_v25, %v1588_v5  ;;  %s1695_s17 = sld [smem:[#allocation7 + $0x17]]  ;;  %s1697_s18 = sld [smem:[#allocation4 + $0x18]] }
  0x59   :  { %v346_v47 = vadd.f32 %v345_v37, %v343_v41  ;;  %v359_v48 = vmul.f32 %v358_v44, %v1444_v0  ;;  %v1189_v49 = vpop.eup %1188  ;;  %v255_v51 = vmul.f32 %v1187_v38, %v254_v60  ;;  %v302_v52 = vstv %s1605_s19  ;;  %s1702_s19 = sld [smem:[#allocation9 + $0x16]] }
  0x5a   :  { %1204 = vtanh.f32 %v315_v35  ;;  %v241_v53 = vadd.f32 %v239_v32, %v209_v14  ;;  %v347_v54 = vadd.f32 %v345_v37, %v344_v43  ;;  %v360_v55 = vmul.f32 %v358_v44, %v1449_v1 }
  0x5b   :  { %1206 = vtanh.f32 %v330_v40  ;;  %v1191_v56 = vpop.eup %1190  ;;  %v242_v57 = vadd.f32 %v240_v39, %v210_v17  ;;  %v362_v58 = vadd.f32 %v361_v45, %v359_v48  ;;  %v374_v59 = vstv %s1611_s20  ;;  %s1708_s20 = sld [smem:[#allocation7 + $0x18]] }
  0x5c   :  { %1208 = vtanh.f32 %v331_v42  ;;  %v1193_v61 = vpop.eup %1192  ;;  %v256_v62 = vmul.f32 %v1189_v49, %v254_v60  ;;  %v318_v63 = vstv %s1615_s21  ;;  %v363_v2 = vadd.f32 %v361_v45, %v360_v55  ;;  %s1710_s21 = sld [smem:[#allocation4 + $0x19]] }
  0x5d   :  { %1210 = vtanh.f32 %v346_v47  ;;  %v1195_v3 = vpop.eup %1194  ;;  %v257_v4 = vadd.f32 %v255_v51, %v225_v46  ;;  %v375_v5 = vmul.f32 %v374_v59, %v1444_v0  ;;  %v376_v6 = vmul.f32 %v374_v59, %v1449_v1 }
  0x5e   :  { %v377_v7 = vstv %s1621_s22  ;;  %v1197_v60 = vpop.eup %1196  ;;  %v271_v8 = vmul.f32 %v1191_v56, %v270_v15  ;;  %v334_v9 = vstv %s1625_s23  ;;  %1212 = vtanh.f32 %v347_v54  ;;  %s1712_s22 = sld [smem:[#allocation9 + $0x17]]  ;;  %s1715_s23 = sld [smem:[#allocation7 + $0x19]] }
  0x5f   :  { %v390_v10 = vstv %s1628_s25  ;;  %v1199_v11 = vpop.eup %1198  ;;  %v272_v12 = vmul.f32 %v1193_v61, %v270_v15  ;;  %1214 = vtanh.f32 %v362_v58  ;;  %v378_v13 = vadd.f32 %v377_v7, %v375_v5  ;;  %s1717_s25 = sld [smem:[#allocation4 + $0x1a]] }
  0x60   :  { %v379_v14 = vadd.f32 %v377_v7, %v376_v6  ;;  %v1201_v16 = vpop.eup %1200  ;;  %v287_v17 = vmul.f32 %v1195_v3, %v286_v26  ;;  %1216 = vtanh.f32 %v363_v2  ;;  %v391_v18 = vmul.f32 %v390_v10, %v1444_v0 }
  0x61   :  { %v393_v19 = vstv %s1634_s24  ;;  %v1203_v20 = vpop.eup %1202  ;;  %v258_v21 = vadd.f32 %v256_v62, %v226_v50  ;;  %1218 = vtanh.f32 %v378_v13  ;;  %v392_v15 = vmul.f32 %v390_v10, %v1449_v1  ;;  %s1725_s24 = sld [smem:[#allocation7 + $0x1a]] }
  0x62   :  { %v406_v22 = vstv %s1640_s1  ;;  %v273_v23 = vadd.f32 %v271_v8, %v241_v53  ;;  %v288_v24 = vmul.f32 %v1197_v60, %v286_v26  ;;  %v303_v25 = vmul.f32 %v1199_v11, %v302_v52  ;;  %s1728_s1 = sld [smem:[#allocation4 + $0x1b]] }
  0x63   :  { %v394_v27 = vadd.f32 %v393_v19, %v391_v18  ;;  %v274_v29 = vadd.f32 %v272_v12, %v242_v57  ;;  %v304_v30 = vmul.f32 %v1201_v16, %v302_v52  ;;  %1220 = vtanh.f32 %v379_v14 }
  0x64   :  { %v1205_v28 = vpop.eup %1204  ;;  %v407_v31 = vmul.f32 %v406_v22, %v1444_v0  ;;  %v289_v33 = vadd.f32 %v287_v17, %v257_v4  ;;  %v319_v26 = vmul.f32 %v1203_v20, %v318_v63  ;;  %v408_v34 = vmul.f32 %v406_v22, %v1449_v1 }
  0x65   :  { %v1207_v32 = vpop.eup %1206  ;;  %v409_v35 = vstv %s1649_s27  ;;  %v350_v37 = vstv %s1647_s26  ;;  %v366_v38 = vstv %s1651_s28  ;;  %v395_v39 = vadd.f32 %v393_v19, %v392_v15  ;;  %s1732_s26 = sld [smem:[#allocation7 + $0x1b]]  ;;  %s1736_s27 = sld [smem:[#allocation9 + $0x18]] }
  0x66   :  { %v1209_v36 = vpop.eup %1208  ;;  %v422_v40 = vstv %s1656_s0  ;;  %v290_v42 = vadd.f32 %v288_v24, %v258_v21  ;;  %v305_v43 = vadd.f32 %v303_v25, %v273_v23  ;;  %v320_v44 = vmul.f32 %v1205_v28, %v318_v63  ;;  %s1743_s28 = sld [smem:[#allocation4 + $0x1c]] }
  0x67   :  { %v1211_v41 = vpop.eup %1210  ;;  %1222 = vtanh.f32 %v394_v27  ;;  %v306_v46 = vadd.f32 %v304_v30, %v274_v29  ;;  %v335_v47 = vmul.f32 %v1207_v32, %v334_v9  ;;  %v382_v48 = vstv %s1664_s29  ;;  %s1751_s0 = sld [smem:[#allocation7 + $0x1c]]  ;;  %s1753_s29 = sld [smem:[#allocation9 + $0x19]] }
  0x68   :  { %v410_v45 = vadd.f32 %v409_v35, %v407_v31  ;;  %v1213_v49 = vpop.eup %1212  ;;  %v321_v50 = vadd.f32 %v319_v26, %v289_v33  ;;  %v336_v51 = vmul.f32 %v1209_v36, %v334_v9  ;;  %v411_v52 = vadd.f32 %v409_v35, %v408_v34 }
  0x69   :  { %v423_v53 = vmul.f32 %v422_v40, %v1444_v0  ;;  %v1215_v54 = vpop.eup %1214  ;;  %v351_v55 = vmul.f32 %v1211_v41, %v350_v37  ;;  %1224 = vtanh.f32 %v395_v39  ;;  %v424_v56 = vmul.f32 %v422_v40, %v1449_v1 }
  0x6a   :  { %v425_v57 = vstv %s1674_s30  ;;  %v1217_v58 = vpop.eup %1216  ;;  %v322_v59 = vadd.f32 %v320_v44, %v290_v42  ;;  %v398_v61 = vstv %s1670_s12  ;;  %v414_v62 = vstv %s1678_s14  ;;  %s1760_s12 = sld [smem:[#allocation4 + $0x1d]]  ;;  %s1775_s14 = sld [smem:[#allocation7 + $0x1e]] }
  0x6b   :  { %v438_v63 = vstv %s1680_s2  ;;  %v1219_v2 = vpop.eup %1218  ;;  %v337_v3 = vadd.f32 %v335_v47, %v305_v43  ;;  %v352_v4 = vmul.f32 %v1213_v49, %v350_v37  ;;  %1226 = vtanh.f32 %v410_v45  ;;  %s1762_s30 = sld [smem:[#allocation7 + $0x1d]]  ;;  %s1766_s2 = sld [smem:[#allocation9 + $0x1a]] }
  0x6c   :  { %v454_v5 = vstv %s1683_s15  ;;  %v338_v6 = vadd.f32 %v336_v51, %v306_v46  ;;  %v367_v7 = vmul.f32 %v1215_v54, %v366_v38  ;;  %1228 = vtanh.f32 %v411_v52  ;;  %s1771_s15 = sld [smem:[#allocation4 + $0x1e]] }
  0x6d   :  { %v426_v60 = vadd.f32 %v425_v57, %v423_v53  ;;  %v1221_v8 = vpop.eup %1220  ;;  %v353_v9 = vadd.f32 %v351_v55, %v321_v50  ;;  %v368_v10 = vmul.f32 %v1217_v58, %v366_v38  ;;  %v427_v11 = vadd.f32 %v425_v57, %v424_v56 }
  0x6e   :  { %v439_v12 = vmul.f32 %v438_v63, %v1444_v0  ;;  %v383_v13 = vmul.f32 %v1219_v2, %v382_v48  ;;  %v440_v14 = vmul.f32 %v438_v63, %v1449_v1  ;;  %v441_v16 = vstv %s1692_s16  ;;  %s1777_s16 = sld [smem:[#allocation9 + $0x1b]] }
  0x6f   :  { %v455_v17 = vmul.f32 %v454_v5, %v1444_v0  ;;  %v354_v18 = vadd.f32 %v352_v4, %v322_v59  ;;  %v430_v19 = vstv %s1690_s13  ;;  %v457_v20 = vstv %s1695_s17  ;;  %s1787_s17 = sld [smem:[#allocation4 + $0x1f]]  ;;  %s1802_s13 = sld [smem:[#allocation9 + $0x1c]] }
  0x70   :  { %v470_v21 = vstv %s1697_s18  ;;  %v369_v22 = vadd.f32 %v367_v7, %v337_v3  ;;  %v384_v23 = vmul.f32 %v1221_v8, %v382_v48  ;;  %1230 = vtanh.f32 %v426_v60  ;;  %s1789_s18 = sld [smem:[#allocation7 + $0x1f]] }
  0x71   :  { %v1223_v15 = vpop.eup %1222  ;;  %v456_v24 = vmul.f32 %v454_v5, %v1449_v1  ;;  %v370_v25 = vadd.f32 %v368_v10, %v338_v6  ;;  %1232 = vtanh.f32 %v427_v11  ;;  %v442_v27 = vadd.f32 %v441_v16, %v439_v12 }
  0x72   :  { %v446_v28 = vstv %s1702_s19  ;;  %v385_v29 = vadd.f32 %v383_v13, %v353_v9  ;;  %v443_v30 = vadd.f32 %v441_v16, %v440_v14  ;;  %v458_v31 = vadd.f32 %v457_v20, %v455_v17  ;;  %s1811_s19 = sld [smem:[#allocation9 + $0x1d]] }
  0x73   :  { %v471_v32 = vmul.f32 %v470_v21, %v1444_v0  ;;  %v1225_v33 = vpop.eup %1224  ;;  %v399_v26 = vmul.f32 %v1223_v15, %v398_v61  ;;  %v472_v34 = vmul.f32 %v470_v21, %v1449_v1  ;;  %v473_v35 = vstv %s1708_s20 }
  0x74   :  { %v486_v36 = vstv %s1710_s21  ;;  %v386_v37 = vadd.f32 %v384_v23, %v354_v18  ;;  %v459_v38 = vadd.f32 %v457_v20, %v456_v24  ;;  %v462_v39 = vstv %s1712_s22  ;;  %s1822_s22 = sld [smem:[#allocation9 + $0x1e]] }
  0x75   :  { %v487_v40 = vmul.f32 %v486_v36, %v1444_v0  ;;  %v1227_v41 = vpop.eup %1226  ;;  %1234 = vtanh.f32 %v442_v27  ;;  %v488_v42 = vmul.f32 %v486_v36, %v1449_v1  ;;  %v489_v43 = vstv %s1715_s23 }
  0x76   :  { %v502_v44 = vstv %s1717_s25  ;;  %v1229_v46 = vpop.eup %1228  ;;  %v400_v47 = vmul.f32 %v1225_v33, %v398_v61  ;;  %1236 = vtanh.f32 %v443_v30  ;;  %v474_v48 = vadd.f32 %v473_v35, %v471_v32 }
  0x77   :  { %v503_v45 = vmul.f32 %v502_v44, %v1444_v0  ;;  %v401_v49 = vadd.f32 %v399_v26, %v369_v22  ;;  %v475_v50 = vadd.f32 %v473_v35, %v472_v34  ;;  %v504_v51 = vmul.f32 %v502_v44, %v1449_v1 }
  0x78   :  { %v505_v52 = vstv %s1725_s24  ;;  %v415_v53 = vmul.f32 %v1227_v41, %v414_v62  ;;  %1238 = vtanh.f32 %v458_v31  ;;  %v490_v54 = vadd.f32 %v489_v43, %v487_v40 }
  0x79   :  { %v518_v55 = vstv %s1728_s1  ;;  %v416_v56 = vmul.f32 %v1229_v46, %v414_v62  ;;  %1240 = vtanh.f32 %v459_v38  ;;  %v491_v57 = vadd.f32 %v489_v43, %v488_v42 }
  0x7a   :  { %v519_v58 = vmul.f32 %v518_v55, %v1444_v0  ;;  %v1231_v59 = vpop.eup %1230  ;;  %1242 = vtanh.f32 %v474_v48  ;;  %v506_v61 = vadd.f32 %v505_v52, %v503_v45  ;;  %v520_v63 = vmul.f32 %v518_v55, %v1449_v1 }
  0x7b   :  { %v521_v2 = vstv %s1732_s26  ;;  %v1233_v3 = vpop.eup %1232  ;;  %v402_v4 = vadd.f32 %v400_v47, %v370_v25  ;;  %1244 = vtanh.f32 %v475_v50  ;;  %v478_v62 = vstv %s1736_s27 }
  0x7c   :  { %v507_v5 = vadd.f32 %v505_v52, %v504_v51  ;;  %v417_v6 = vadd.f32 %v415_v53, %v385_v29  ;;  %1246 = vtanh.f32 %v490_v54  ;;  %v522_v7 = vadd.f32 %v521_v2, %v519_v58  ;;  %v1296_v52 = vld [vmem:[%s1930_s5] sm:$0xff] }
  0x7d   :  { %v534_v60 = vstv %s1743_s28  ;;  %v418_v8 = vadd.f32 %v416_v56, %v386_v37  ;;  %1248 = vtanh.f32 %v491_v57  ;;  %v523_v9 = vadd.f32 %v521_v2, %v520_v63  ;;  %v1297_v57 = vld [vmem:[%s1930_s5 + $0x8] sm:$0xff] }
  0x7e   :  { %v535_v10 = vmul.f32 %v534_v60, %v1444_v0  ;;  %v431_v11 = vmul.f32 %v1231_v59, %v430_v19  ;;  %1250 = vtanh.f32 %v506_v61  ;;  %v536_v12 = vmul.f32 %v534_v60, %v1449_v1  ;;  %v609_v59 = vld [vmem:[%s1932_s7] sm:$0xff]  ;;  %v611_v61 = vld [vmem:[%s1932_s7 + $0x10] sm:$0xff] }
  0x7f   :  { %v537_v13 = vstv %s1751_s0  ;;  %v1235_v14 = vpop.eup %1234  ;;  %v432_v16 = vmul.f32 %v1233_v3, %v430_v19  ;;  %v494_v17 = vstv %s1753_s29  ;;  %1252 = vtanh.f32 %v507_v5 }
  0x80   :  { %v538_v18 = vadd.f32 %v537_v13, %v535_v10  ;;  %v1237_v20 = vpop.eup %1236  ;;  %1254 = vtanh.f32 %v522_v7  ;;  %v539_v21 = vadd.f32 %v537_v13, %v536_v12  ;;  %v550_v15 = vstv %s1760_s12  ;;  %s1846_s12 = sld [smem:[#allocation9 + $0x1f]] }
  0x81   :  { %v553_v22 = vstv %s1762_s30  ;;  %v510_v23 = vstv %s1766_s2  ;;  %1256 = vtanh.f32 %v523_v9  ;;  %v551_v24 = vmul.f32 %v550_v15, %v1444_v0 }
  0x82   :  { %v552_v19 = vmul.f32 %v550_v15, %v1449_v1  ;;  %v1239_v25 = vpop.eup %1238  ;;  %v433_v27 = vadd.f32 %v431_v11, %v401_v49  ;;  %v447_v29 = vmul.f32 %v1235_v14, %v446_v28  ;;  %1258 = vtanh.f32 %v538_v18  ;;  %v605_v49 = vld [vmem:[%s1931_s6] sm:$0xff] }
  0x83   :  { %v566_v30 = vstv %s1771_s15  ;;  %v1241_v31 = vpop.eup %1240  ;;  %1260 = vtanh.f32 %v539_v21  ;;  %v554_v32 = vadd.f32 %v553_v22, %v551_v24  ;;  %v434_v35 = vadd.f32 %v432_v16, %v402_v4  ;;  %1087 = vmatprep.mubr.msk.f32.mxu0 %vm633_vm0, %v605_v49  ;;  %v610_v16 = vld [vmem:[%s1932_s7 + $0x8] sm:$0xff] }
  0x84   :  { %v555_v33 = vadd.f32 %v553_v22, %v552_v19  ;;  %v567_v26 = vmul.f32 %v566_v30, %v1444_v0  ;;  %v1243_v34 = vpop.eup %1242  ;;  %v448_v36 = vmul.f32 %v1237_v20, %v446_v28  ;;  %v568_v37 = vmul.f32 %v566_v30, %v1449_v1 }
  0x85   :  { %v569_v38 = vstv %s1775_s14  ;;  %v1245_v40 = vpop.eup %1244  ;;  %v463_v41 = vmul.f32 %v1239_v25, %v462_v39  ;;  %v526_v42 = vstv %s1777_s16  ;;  %1262 = vtanh.f32 %v554_v32  ;;  %v739_v32 = vld [vmem:[%s1934_s9] sm:$0xff] }
  0x86   :  { %v570_v43 = vadd.f32 %v569_v38, %v567_v26  ;;  %v1247_v0 = vpop.eup %1246  ;;  %v449_v44 = vadd.f32 %v447_v29, %v417_v6  ;;  %v464_v46 = vmul.f32 %v1241_v31, %v462_v39  ;;  %1264 = vtanh.f32 %v555_v33  ;;  %v740_v33 = vld [vmem:[%s1934_s9 + $0x8] sm:$0xff] }
  0x87   :  { %v571_v28 = vadd.f32 %v569_v38, %v568_v37  ;;  %v1249_v1 = vpop.eup %1248  ;;  %v479_v47 = vmul.f32 %v1243_v34, %v478_v62  ;;  %v582_v48 = vstv %s1787_s17  ;;  %v585_v45 = vstv %s1789_s18  ;;  %s1369_s18 = smov [#allocation10]  }
  0x88   :  { %1266 = vtanh.f32 %v570_v43  ;;  %v1251_v50 = vpop.eup %1250  ;;  %v450_v51 = vadd.f32 %v448_v36, %v418_v8  ;;  %v480_v39 = vmul.f32 %v1245_v40, %v478_v62  ;;  %v583_v53 = vmul.f32 %v1296_v52, %v582_v48  ;;  %v741_v43 = vld [vmem:[%s1934_s9 + $0x10] sm:$0xff] }
  0x89   :  { %1268 = vtanh.f32 %v571_v28  ;;  %v1253_v54 = vpop.eup %1252  ;;  %v465_v55 = vadd.f32 %v463_v41, %v433_v27  ;;  %v495_v56 = vmul.f32 %v1247_v0, %v494_v17  ;;  %v584_v58 = vmul.f32 %v1297_v57, %v582_v48  ;;  %v742_v0 = vld [vmem:[%s1934_s9 + $0x18] sm:$0xff] }
  0x8a   :  { %v1255_v63 = vpop.eup %1254  ;;  %v466_v2 = vadd.f32 %v464_v46, %v434_v35  ;;  %v496_v3 = vmul.f32 %v1249_v1, %v494_v17  ;;  %v586_v4 = vadd.f32 %v585_v45, %v583_v53  ;;  %v481_v5 = vadd.f32 %v479_v47, %v449_v44  ;;  %v612_v17 = vld [vmem:[%s1932_s7 + $0x18] sm:$0xff] }
  0x8b   :  { %v1257_v62 = vpop.eup %1256  ;;  %v511_v6 = vmul.f32 %v1251_v50, %v510_v23  ;;  %v587_v7 = vadd.f32 %v585_v45, %v584_v58  ;;  %v1365_v60 = vmov 0   ;;  %v482_v9 = vadd.f32 %v480_v39, %v450_v51 }
  0x8c   :  { %1144 = vset.pattern.permute.xlu0 %v1365_v60  ;;  %1145 = vset.pattern.permute.xlu1 %v1365_v60  ;;  %v1259_v8 = vpop.eup %1258  ;;  %v512_v10 = vmul.f32 %v1253_v54, %v510_v23  ;;  %v542_v11 = vstv %s1802_s13  ;;  %1270 = vtanh.f32 %v586_v4  ;;  %v497_v13 = vadd.f32 %v495_v56, %v465_v55  ;;  %v960_v55 = vld [vmem:[%s1930_s5 + $0x10] sm:$0xff]  ;;  %v961_v56 = vld [vmem:[%s1930_s5 + $0x18] sm:$0xff]  ;;  %s949_s13 = sshll.u32 %s1369_s18, 4  ;;  %s950_s13 = int_to_ptr.vmem [resolvable:$true] %s949_s13 }
  0x8d   :  { %615 = vperm.xlu0 %1144, %v609_v59   ;;  %625 = vperm.xlu1 %1145, %v611_v61   ;;  %v1261_v12 = vpop.eup %1260  ;;  %v527_v14 = vmul.f32 %v1255_v63, %v526_v42  ;;  %1272 = vtanh.f32 %v587_v7  ;;  %v498_v18 = vadd.f32 %v496_v3, %v466_v2  ;;  %v528_v20 = vmul.f32 %v1257_v62, %v526_v42  ;;  %v606_v2 = vld [vmem:[%s1931_s6 + $0x8] sm:$0xff]  ;;  %v607_v3 = vld [vmem:[%s1931_s6 + $0x10] sm:$0xff]  ;;  %v608_v4 = vld [vmem:[%s1931_s6 + $0x18] sm:$0xff]  ;;  %s1338_s20 = scalar_lea.vmem %s950_s13, 32  ;;  %p1339_p2 = scmp.lt.s32.totalorder %s950_s13, %s950_s13 }
  0x8e   :  { %v558_v21 = vstv %s1811_s19  ;;  %v513_v22 = vadd.f32 %v511_v6, %v481_v5  ;;  %v543_v23 = vmul.f32 %v1259_v8, %v542_v11  ;;  %v514_v19 = vadd.f32 %v512_v10, %v482_v9  ;;  %v735_v62 = vld [vmem:[%s1933_s8] sm:$0xff]  ;;  %s1334_s19 = scalar_lea.vmem %s950_s13, 16 }
  0x8f   :  { %v1263_v15 = vpop.eup %1262  ;;  %v544_v25 = vmul.f32 %v1261_v12, %v542_v11  ;;  %v574_v27 = vstv %s1822_s22  ;;  %v529_v30 = vadd.f32 %v527_v14, %v497_v13  ;;  %v530_v34 = vadd.f32 %v528_v20, %v498_v18  ;;  %1101 = vmatprep.mubr.msk.f32.mxu1 %vm763_vm1, %v735_v62  ;;  %p1335_p1 = scmp.ne.s32.totalorder %s950_s13, %s1334_s19  ;;  %p1340_p3 = scmp.lt.s32.totalorder %s1338_s20, %s1334_s19 }
  0x90   :  { %v1265_v24 = vpop.eup %1264  ;;  %v559_v31 = vmul.f32 %v1263_v15, %v558_v21  ;;  %v545_v36 = vadd.f32 %v543_v23, %v513_v22  ;;  %v590_v41 = vstv %s1846_s12  ;;  %v598_v51 = vstv %s1928_s3  ;;  %v736_v23 = vld [vmem:[%s1933_s8 + $0x8] sm:$0xff] }
  0x91   :  { %620 = vperm.xlu0 %1144, %v610_v16   ;;  %630 = vperm.xlu1 %1145, %v612_v17   ;;  %v560_v35 = vmul.f32 %v1265_v24, %v558_v21  ;;  %v546_v38 = vadd.f32 %v544_v25, %v514_v19  ;;  %v737_v24 = vld [vmem:[%s1933_s8 + $0x10] sm:$0xff]  ;;  %v738_v19 = vld [vmem:[%s1933_s8 + $0x18] sm:$0xff]  ;;  %v1366_v25 = vmov 0.0|0.0   ;;  %p1341_p4 = por %p1340_p3, %p1339_p2 }
  0x92   :  { %v1267_v29 = vpop.eup %1266  ;;  %v561_v42 = vadd.f32 %v559_v31, %v529_v30 }
  0x93   :  { %v1269_v26 = vpop.eup %1268  ;;  %v575_v37 = vmul.f32 %v1267_v29, %v574_v27  ;;  %v562_v46 = vadd.f32 %v560_v35, %v530_v34  ;;  %p1342_p5 = pnand %p1341_p4, %p1335_p1 }
  0x94   :  { %v576_v40 = vmul.f32 %v1269_v26, %v574_v27  ;;  %v1368_v27 = vmov 0.0  }
  0x95   :  { %745 = vperm.xlu0 %1144, %v739_v32   ;;  %750 = vperm.xlu1 %1145, %v740_v33   ;;  %v577_v1 = vadd.f32 %v575_v37, %v545_v36 }
  0x96   :  { %v1271_v44 = vpop.eup %1270  ;;  %v578_v48 = vadd.f32 %v576_v40, %v546_v38 }
  0x97   :  { %v1273_v28 = vpop.eup %1272  ;;  %v591_v47 = vmul.f32 %v1271_v44, %v590_v41 }
  0x98   :  { %v592_v45 = vmul.f32 %v1273_v28, %v590_v41  ;;  %v865_v28 = vld [vmem:[%s1935_s10] sm:$0x1] }
  0x99   :  { %755 = vperm.xlu0 %1144, %v741_v43   ;;  %760 = vperm.xlu1 %1145, %v742_v0   ;;  %v593_v49 = vadd.f32 %v591_v47, %v561_v42 }
  0x9a   :  { %v594_v50 = vadd.f32 %v592_v45, %v562_v46 }
  0x9b   :  { %v595_v39 = vadd.f32 %v593_v49, %v577_v1  ;;  %v867_v1 = vstv %s1929_s4 }
  0x9c   :  { %v596_v52 = vadd.f32 %v594_v50, %v578_v48 }
  0x9d   :  { %v599_v53 = vadd.f32 %v598_v51, %v595_v39 }
  0x9e   :  { %v600_v54 = vadd.f32 %v598_v51, %v596_v52 }
  0x9f   :  { %1274 = vtanh.f32 %v599_v53 }
  0xa0   :  { %1276 = vtanh.f32 %v600_v54 }
  0xa9   :  { %v1275_v57 = vpop.eup %1274 }
  0xaa   :  { %v1277_v58 = vpop.eup %1276  ;;  %v603_v59 = vmul.f32 %v1275_v57, %v960_v55 }
  0xab   :  { %v604_v61 = vmul.f32 %v1277_v58, %v961_v56 }
  0xad   :  { %v1118_v63 = vpack.c.bf16 %v604_v61, %v603_v59 }
  0xaf   :  { %1119 = vmatprep.subr.bf16.mxu0 %v1118_v63 }
  0xb0   :  { %1121 = vmatpush3.bf16.msra.mxu0 %v1118_v63 }
  0xb1   :  { %1130 = vmatprep.subr.bf16.mxu0 %v1366_v25 }
  0xb3   :  { %1088 = vmatmul.mubr.msk.f32.vlgmr.msra.gmra.mrb[0].mxu0 %vm633_vm0, %v606_v2 }
  0xb4   :  { %1090 = vmatprep.mubr.msk.f32.mxu0 %vm633_vm0, %v607_v3 }
  0xb7   :  { %1091 = vmatmul.mubr.msk.f32.gmra.mrb[2].mxu0 %vm633_vm0, %v608_v4 }
  0xb8   :  { %1115 = vmatprep.mubr.msk.f32.mxu0 %vm1367_vm2, %v1368_v27 }
 0x10c   :  { %v616_v5 = vpop.permute.xlu0 %615  ;;  %v626_v6 = vpop.permute.xlu1 %625 }
 0x110   :  { %v621_v7 = vpop.permute.xlu0 %620  ;;  %v631_v11 = vpop.permute.xlu1 %630 }
 0x114   :  { %v751_v29 = vpop.permute.xlu1 %750  ;;  %v746_v30 = vpop.permute.xlu0 %745 }
 0x118   :  { %v761_v34 = vpop.permute.xlu1 %760  ;;  %v756_v36 = vpop.permute.xlu0 %755 }
 0x186   :  { %v1089_v60 = vpop.f32.mrb[0].mxu0 }
 0x187   :  { %v718_v8 = vadd.f32 %v1089_v60, %v621_v7  ;;  %v712_v9 = vpop.f32.mrb[1].mxu0 }
 0x188   :  { %v713_v10 = vadd.f32 %v712_v9, %v616_v5 }
 0x189   :  { %1278 = vtanh.f32 %v718_v8 }
 0x18a   :  { %1280 = vtanh.f32 %v713_v10  ;;  %v1092_v12 = vpop.f32.mrb[2].mxu0 }
 0x18b   :  { %v728_v13 = vadd.f32 %v1092_v12, %v631_v11  ;;  %v722_v14 = vpop.f32.mrb[3].mxu0 }
 0x18c   :  { %v723_v16 = vadd.f32 %v722_v14, %v626_v6 }
 0x18d   :  { %1282 = vtanh.f32 %v728_v13 }
 0x18e   :  { %1284 = vtanh.f32 %v723_v16 }
 0x193   :  { %v1279_v17 = vpop.eup %1278 }
 0x194   :  { %v1281_v18 = vpop.eup %1280 }
 0x195   :  { %v1122_v20 = vpack.c.bf16 %v1279_v17, %v1281_v18 }
 0x197   :  { %v1283_v21 = vpop.eup %1282  ;;  %1123 = vmatprep.subr.bf16.mxu1 %v1122_v20 }
 0x198   :  { %v1285_v15 = vpop.eup %1284  ;;  %1125 = vmatpush3.bf16.msra.mxu1 %v1122_v20 }
 0x199   :  { %v1126_v22 = vpack.c.bf16 %v1283_v21, %v1285_v15 }
 0x19b   :  { %1127 = vmatprep.subr.bf16.mxu1 %v1126_v22 }
 0x19c   :  { %1129 = vmatpush3.bf16.msra.mxu1 %v1126_v22 }
 0x19f   :  { %1102 = vmatmul.mubr.msk.f32.vlgmr.msra.gmra.mrb[0].mxu1 %vm763_vm1, %v736_v23 }
 0x1a0   :  { %1104 = vmatprep.mubr.msk.f32.mxu1 %vm763_vm1, %v737_v24 }
 0x1a3   :  { %1105 = vmatmul.mubr.msk.f32.gmra.mrb[2].mxu1 %vm763_vm1, %v738_v19 }
 0x272   :  { %v1103_v31 = vpop.f32.mrb[0].mxu1 }
 0x273   :  { %v848_v32 = vadd.f32 %v1103_v31, %v751_v29  ;;  %v842_v33 = vpop.f32.mrb[1].mxu1 }
 0x274   :  { %v843_v26 = vadd.f32 %v842_v33, %v746_v30 }
 0x275   :  { %1286 = vtanh.f32 %v848_v32 }
 0x276   :  { %1288 = vtanh.f32 %v843_v26  ;;  %v1106_v35 = vpop.f32.mrb[2].mxu1 }
 0x277   :  { %v858_v37 = vadd.f32 %v1106_v35, %v761_v34  ;;  %v852_v38 = vpop.f32.mrb[3].mxu1 }
 0x278   :  { %v853_v40 = vadd.f32 %v852_v38, %v756_v36 }
 0x279   :  { %1290 = vtanh.f32 %v858_v37 }
 0x27a   :  { %1292 = vtanh.f32 %v853_v40 }
 0x27f   :  { %v1287_v41 = vpop.eup %1286 }
 0x280   :  { %v1289_v42 = vpop.eup %1288 }
 0x281   :  { %v1131_v43 = vpack.c.bf16 %v1287_v41, %v1289_v42 }
 0x283   :  { %v1291_v0 = vpop.eup %1290  ;;  %1132 = vmatpush3.bf16.msra.mxu0 %v1131_v43 }
 0x284   :  { %v1293_v44 = vpop.eup %1292  ;;  %1133 = vmatprep.subr.bf16.mxu0 %v1366_v25 }
 0x285   :  { %v1134_v46 = vpack.c.bf16 %v1291_v0, %v1293_v44 }
 0x287   :  { %1135 = vmatpush3.bf16.msra.mxu0 %v1134_v46 }
 0x28a   :  { %1116 = vmatmul.mubr.msk.f32.vlgmr.msra.gmra.mrb[4].mxu0 %vm763_vm1, %v865_v28 }
 0x35d   :  { %v937_v47 = vpop.f32.mrb[4].mxu0 }
 0x35e   :  { %v938_v48 = vadd.f32 %v937_v47, %v867_v1  ;;  %v1117_v45 = vpop.f32.mrb[5].mxu0 }
 0x360   :  { %1294 = vtanh.f32 %v938_v48 }
 0x36a   :  { %v1295_v49 = vpop.eup %1294 }
 0x36b   :  { %942 = vst [vmem:[#allocation10] sm:$0x1] %v1295_v49 }
 0x36c   :  { %1345 = shalt.err (!%p1342_p5)
}
 0x36d   :  { %s1346_s4 = scalar_lea.hbm %s1936_s11, 16 }
 0x36e   :  { %p1347_p6 = scmp.ne.s32.totalorder %s1936_s11, %s1346_s4  ;;  %p1350_p7 = scmp.lt.u32.totalorder %s1346_s4, %s1936_s11 }
 0x370   :  { %p1352_p8 = pnand %p1350_p7, %p1347_p6 }
 0x372   :  { %1355 = shalt.err (!%p1352_p8)
}
 0x373   :  { %952 = dma.vmem_to_hbm [thread:$0]  %s950_s13, 16, %s1936_s11, [#allocation5]  }
 0x374   :  { %1360 = dma.done.wait [#allocation5], 16  }
 0x375   :  { %1361 = vsyncadd [#allocation5], 4294967280 }
 0x376   :  { %956 = vsyncpa [#allocation5], 1 }
 0x377   :  { %957 = vsyncpa [#allocation6], 1 }
 0x378   :  { %958 = vsyncpa [#allocation8], 1 }

</bundles_post_ra>
